<compile_context>
chip_gen: v7x
topology: tpu7x:2x2x1
jax: 0.10.0
libtpu: 0.0.40
codegen_flags: <defaults>
</compile_context>

<pallas_src>
import functools

import jax
import jax.numpy as jnp
from jax.experimental import pallas as pl
from jax.experimental.pallas import tpu as pltpu

LANE = 128   # TPU lane width (last-dim padding target)
SUB = 8      # TPU sublane width (second-to-last padding target)


# ------------------------------ helpers ------------------------------------


def _round_up(v, m):
    return ((v + m - 1) // m) * m


def _pad2(a, rows, cols):
    return jnp.pad(a, ((0, rows - a.shape[0]), (0, cols - a.shape[1])))


# --------------------------- fused GCN kernel ------------------------------


def _fused_gcn_kernel(a_ref, x_ref, wcat_ref, bcat_ref, p_ref, wlin_ref, blin_ref,
                      o_ref, xwb_ref, acc_ref, pooled_ref,
                      *, tm, tk, f, out_mode, a_resident):
    """Grid = (layers, row tiles, contraction tiles).

    xwb_ref : (2, Np, 2F) bf16 ping-pong buffer holding
              [h_prev @ W_rel | h_prev @ W_root + b] for the current / next layer.
    acc_ref : (tm, F) f32 per-tile accumulator over the contraction tiles.
    pooled_ref : (Gp, F) f32 running global_mean_pool accumulator.
    """
    l = pl.program_id(0)       # layer
    i = pl.program_id(1)       # A row tile
    k = pl.program_id(2)       # A contraction tile
    n_layers = pl.num_programs(0)
    n_tiles = pl.num_programs(1)
    n_k = pl.num_programs(2)
    last_l = n_layers - 1

    cur = l % 2                # XWb slot of the current layer
    nxt = (l + 1) % 2          # XWb slot being built for the next layer

    # --- one-time head prologue: XWb for layer 0 from X, chunked by row tile --
    @pl.when((l == 0) & (i == 0) & (k == 0))
    def _():
        w0 = wcat_ref[0]
        b0 = bcat_ref[0]

        @pl.loop(0, n_tiles)
        def _(t):
            r0 = pl.multiple_of(t * tm, tm)
            v = jnp.dot(x_ref[pl.ds(r0, tm), :], w0,
                        preferred_element_type=jnp.float32) + b0
            xwb_ref[0, pl.ds(r0, tm), :] = v.astype(jnp.bfloat16)

    if out_mode in ("pool", "pool_lin"):
        @pl.when((l == last_l) & (i == 0) & (k == 0))
        def _():
            pooled_ref[...] = jnp.zeros_like(pooled_ref)

    row0 = pl.multiple_of(i * tm, tm)

    # --- k == 0: seed accumulator with root + bias term (folded into cols F:2F)
    @pl.when(k == 0)
    def _():
        acc_ref[...] = xwb_ref[cur, pl.ds(row0, tm), pl.ds(f, f)].astype(jnp.float32)

    # --- MXU: A row tile x XW_rel chunk (bf16 operands, f32 accumulation) -----
    kk = pl.multiple_of(k * tk, tk)
    if a_resident:
        a_tile = a_ref[pl.ds(row0, tm), pl.ds(kk, tk)]
    else:
        a_tile = a_ref[...]
    xw_chunk = xwb_ref[cur, pl.ds(kk, tk), pl.ds(0, f)]
    acc_ref[...] += jnp.dot(a_tile, xw_chunk, preferred_element_type=jnp.float32)

    # --- tile epilogue at the last contraction step ---------------------------
    @pl.when(k == n_k - 1)
    def _():
        acc = acc_ref[...]

        # Non-final layers: ReLU, then pipeline the NEXT layer's XWb rows for
        # this tile (prologue folded into the tile loop; no serialized matmul
        # at the head of layers 1..L-1).
        @pl.when(l < last_l)
        def _():
            h_tile = jnp.maximum(acc, 0.0).astype(jnp.bfloat16)
            lnext = l + 1
            v = jnp.dot(h_tile, wcat_ref[lnext],
                        preferred_element_type=jnp.float32) + bcat_ref[lnext]
            xwb_ref[nxt, pl.ds(row0, tm), :] = v.astype(jnp.bfloat16)

        # Final layer (no ReLU): pooling / classifier head, per row tile.
        @pl.when(l == last_l)
        def _():
            if out_mode in ("pool", "pool_lin"):
                pooled_ref[...] += jnp.dot(p_ref[...], acc.astype(jnp.bfloat16),
                                           preferred_element_type=jnp.float32)

                @pl.when(i == n_tiles - 1)
                def _():
                    if out_mode == "pool_lin":
                        y = (jnp.dot(pooled_ref[...].astype(jnp.bfloat16),
                                     wlin_ref[...],
                                     preferred_element_type=jnp.float32)
                             + blin_ref[...])
                    else:
                        y = pooled_ref[...]
                    o_ref[...] = y.astype(o_ref.dtype)
            elif out_mode == "nodes_lin":
                y = (jnp.dot(acc.astype(jnp.bfloat16), wlin_ref[...],
                             preferred_element_type=jnp.float32) + blin_ref[...])
                o_ref[...] = y.astype(o_ref.dtype)
            else:  # "nodes"
                o_ref[...] = acc.astype(o_ref.dtype)


def fused_gcn(A, Xp, Wcat, Bcat, P, Wlin, blin, *, out_mode, tm, tk, a_resident):
    Np, F = Xp.shape
    Gp = P.shape[0]
    Op = Wlin.shape[1]
    n_layers = Wcat.shape[0]
    n_tiles = Np // tm
    n_k = Np // tk

    if out_mode == "pool_lin":
        out_shape = (Gp, Op)
        out_spec = pl.BlockSpec((Gp, Op), lambda l, i, k: (0, 0))
    elif out_mode == "pool":
        out_shape = (Gp, F)
        out_spec = pl.BlockSpec((Gp, F), lambda l, i, k: (0, 0))
    elif out_mode == "nodes_lin":
        out_shape = (Np, Op)
        out_spec = pl.BlockSpec((tm, Op), lambda l, i, k: (i, 0))
    else:
        out_shape = (Np, F)
        out_spec = pl.BlockSpec((tm, F), lambda l, i, k: (i, 0))

    if a_resident:
        a_spec = pl.BlockSpec((Np, Np), lambda l, i, k: (0, 0))   # DMA'd once
    else:
        a_spec = pl.BlockSpec((tm, tk), lambda l, i, k: (i, k))   # streamed tiles

    flops = (n_layers * (2 * Np * Np * F + 2 * Np * F * (2 * F))
             + 2 * Gp * Np * F + 2 * Gp * F * Op)
    a_bytes = A.size * 2 if a_resident else n_layers * A.size * 2
    bytes_accessed = (a_bytes + Xp.size * 2 + Wcat.size * 2 + Bcat.size * 4
                      + P.size * 2 + Wlin.size * 2 + blin.size * 4
                      + out_shape[0] * out_shape[1] * 4)

    vmem_est = ((A.size * 2 if a_resident else 2 * tm * tk * 2)     # A (+dbl buf)
                + Xp.size * 2                                        # X resident
                + 2 * Np * (2 * F) * 2                               # XWb ping-pong
                + Wcat.size * 2 + Bcat.size * 4                      # weights/bias
                + 2 * Gp * tm * 2 + Wlin.size * 2 + blin.size * 4    # P tiles, lin
                + tm * F * 4 + Gp * F * 4                            # acc, pooled
                + 2 * out_shape[0] * out_shape[1] * 4)               # out block
    vmem_limit = int(min(64 * 1024 * 1024, max(32 * 1024 * 1024, 2 * vmem_est)))

    kernel = functools.partial(_fused_gcn_kernel, tm=tm, tk=tk, f=F,
                               out_mode=out_mode, a_resident=a_resident)
    return pl.pallas_call(
        kernel,
        out_shape=jax.ShapeDtypeStruct(out_shape, jnp.float32),
        grid=(n_layers, n_tiles, n_k),
        in_specs=[
            a_spec,                                                      # A (bf16)
            pl.BlockSpec((Np, F), lambda l, i, k: (0, 0)),               # X resident
            pl.BlockSpec((n_layers, F, 2 * F), lambda l, i, k: (0, 0, 0)),  # [Wrel|Wroot]
            pl.BlockSpec((n_layers, 1, 2 * F), lambda l, i, k: (0, 0, 0)),  # [0|b]
            pl.BlockSpec((Gp, tm), lambda l, i, k: (0, i)),              # P row tiles
            pl.BlockSpec((F, Op), lambda l, i, k: (0, 0)),               # W_lin
            pl.BlockSpec((1, Op), lambda l, i, k: (0, 0)),               # b_lin
        ],
        out_specs=out_spec,
        scratch_shapes=[pltpu.VMEM((2, Np, 2 * F), jnp.bfloat16),        # XWb ping-pong
                        pltpu.VMEM((tm, F), jnp.float32),                # acc
                        pltpu.VMEM((Gp, F), jnp.float32)],               # pooled
        compiler_params=pltpu.CompilerParams(
            # Cross-layer / cross-tile carries through the XWb & pooled scratch
            # force every axis sequential on a single TensorCore.
            dimension_semantics=("arbitrary", "arbitrary", "arbitrary"),
            vmem_limit_bytes=vmem_limit),
        cost_estimate=pl.CostEstimate(flops=flops, transcendentals=0,
                                      bytes_accessed=bytes_accessed),
    )(A, Xp, Wcat, Bcat, P, Wlin, blin)


# ---------------------- classifier-only linear kernel ----------------------


def _linear_kernel(x_ref, w_ref, b_ref, o_ref):
    acc = jnp.dot(x_ref[...], w_ref[...], preferred_element_type=jnp.float32)
    o_ref[...] = (acc + b_ref[...]).astype(o_ref.dtype)


def linear(x, W, b):
    """Lane-dense padded Linear (classifier=True path). bf16 MXU, f32 accum."""
    M, K = x.shape
    O = W.shape[1]
    Mp = _round_up(max(M, 1), SUB)
    Kp = _round_up(K, LANE)
    Op = _round_up(O, LANE)
    xp = _pad2(x.astype(jnp.float32), Mp, Kp).astype(jnp.bfloat16)
    Wp = _pad2(W.astype(jnp.float32), Kp, Op).astype(jnp.bfloat16)
    bp = jnp.pad(b.astype(jnp.float32), (0, Op - O)).reshape(1, Op)
    out = pl.pallas_call(
        _linear_kernel,
        out_shape=jax.ShapeDtypeStruct((Mp, Op), jnp.float32),
        grid=(1,),
        in_specs=[pl.BlockSpec((Mp, Kp), lambda i: (0, 0)),
                  pl.BlockSpec((Kp, Op), lambda i: (0, 0)),
                  pl.BlockSpec((1, Op), lambda i: (0, 0))],
        out_specs=pl.BlockSpec((Mp, Op), lambda i: (0, 0)),
        compiler_params=pltpu.CompilerParams(
            dimension_semantics=("arbitrary",)),
    )(xp, Wp, bp)
    return out[:M, :O]


# ------------------------------- GCN module --------------------------------


def init_gcn_params(key, input_channels, hidden_channels, output_channels):
    """Deterministic synthetic init. Weights stored (in, out) so kernels do X @ W."""
    def lin_params(k, fin, fout, bias=True):
        kw, kb = jax.random.split(k)
        bound = 1.0 / jnp.sqrt(jnp.maximum(fin, 1)).astype(jnp.float32)
        W = jax.random.uniform(kw, (fin, fout), jnp.float32, -bound, bound)
        b = (jax.random.uniform(kb, (fout,), jnp.float32, -bound, bound)
             if bias else None)
        return W, b

    keys = jax.random.split(key, 7)
    params = {}
    dims = [(input_channels, hidden_channels),
            (hidden_channels, hidden_channels),
            (hidden_channels, hidden_channels)]
    for i, (fin, fout) in enumerate(dims, start=1):
        W_rel, b_rel = lin_params(keys[2 * (i - 1)], fin, fout, bias=True)
        W_root, _ = lin_params(keys[2 * (i - 1) + 1], fin, fout, bias=False)
        params[f"conv{i}"] = {"W_rel": W_rel, "W_root": W_root, "b": b_rel}
    W_lin, b_lin = lin_params(keys[6], hidden_channels, output_channels)
    params["lin"] = {"W": W_lin, "b": b_lin}
    return params


def gcn_forward(params, x, edge_index=None, batch=None, num_graphs=None,
                return_embedding=False, classifier=False, row_tile=None):
    if classifier:
        return linear(x, params["lin"]["W"], params["lin"]["b"])

    N, Cin = x.shape
    H = params["conv1"]["W_rel"].shape[1]
    O = params["lin"]["W"].shape[1]

    F = _round_up(max(Cin, H), LANE)        # unified (padded) channel width
    Op = _round_up(O, LANE)

    # Row tile: 256 on big graphs (halves grid-step overhead), 128 otherwise.
    tm = row_tile if row_tile is not None else (256 if N > 256 else 128)
    Np = _round_up(max(N, 1), tm)
    # Keep A fully VMEM-resident when it fits a conservative budget (it is then
    # read once instead of once per layer); otherwise stream bounded (tm, tk)
    # tiles so VMEM use is independent of N.
    a_resident = Np * Np * 2 <= 24 * 1024 * 1024
    if Np <= 2048:
        tk = Np
    else:
        tk = next(c for c in (2048, 1024, 512, 256, 128) if Np % c == 0)

    # Dense adjacency in bf16 (exact for edge multiplicities <= 256).
    # A[i, j] accumulates per edge j -> i (duplicates add, matching PyG 'add').
    src, dst = edge_index[0], edge_index[1]
    A = jnp.zeros((Np, Np), jnp.float32).at[dst, src].add(1.0).astype(jnp.bfloat16)

    Xp = _pad2(x.astype(jnp.float32), Np, F).astype(jnp.bfloat16)

    # Fused per-layer weights [W_rel | W_root] and bias [0 | b] (bias folded
    # into the root half of the XWb prologue).
    def cat_w(k):
        wr = _pad2(params[f"conv{k}"]["W_rel"], F, F)
        wo = _pad2(params[f"conv{k}"]["W_root"], F, F)
        return jnp.concatenate([wr, wo], axis=1)

    Wcat = jnp.stack([cat_w(k) for k in (1, 2, 3)]).astype(jnp.bfloat16)
    Bcat = jnp.stack([
        jnp.concatenate([jnp.zeros((F,), jnp.float32),
                         jnp.pad(params[f"conv{k}"]["b"], (0, F - H))]).reshape(1, 2 * F)
        for k in (1, 2, 3)]).astype(jnp.float32)

    Wlin = _pad2(params["lin"]["W"], F, Op).astype(jnp.bfloat16)
    blin = jnp.pad(params["lin"]["b"], (0, Op - O)).reshape(1, Op).astype(jnp.float32)

    if batch is not None:
        if num_graphs is None:
            # Static num_graphs keeps the wrapper traceable (no device sync).
            raise ValueError("num_graphs must be passed statically when batch is given")
        Gp = _round_up(max(num_graphs, 1), SUB)
        onehot = (batch[None, :] == jnp.arange(num_graphs)[:, None]).astype(jnp.float32)
        counts = jnp.maximum(onehot.sum(axis=1, keepdims=True), 1.0)
        P = _pad2(onehot / counts, Gp, Np).astype(jnp.bfloat16)
        out_mode = "pool" if return_embedding else "pool_lin"
    else:
        Gp = SUB
        P = jnp.zeros((Gp, Np), jnp.bfloat16)
        out_mode = "nodes" if return_embedding else "nodes_lin"

    out = fused_gcn(A, Xp, Wcat, Bcat, P, Wlin, blin,
                    out_mode=out_mode, tm=tm, tk=tk, a_resident=a_resident)

    if out_mode == "pool_lin":
        return out[:num_graphs, :O]
    if out_mode == "pool":
        return out[:num_graphs, :H]
    if out_mode == "nodes_lin":
        return out[:N, :O]
    return out[:N, :H]


# --------------------------- pure-JAX reference -----------------------------


def _reference_forward(params, x, edge_index, batch, num_graphs):
    N = x.shape[0]
    A = jnp.zeros((N, N), jnp.float32).at[edge_index[1], edge_index[0]].add(1.0)
    h = x
    for k, relu in ((1, True), (2, True), (3, False)):
        p = params[f"conv{k}"]
        h = A @ (h @ p["W_rel"]) + h @ p["W_root"] + p["b"]
        if relu:
            h = jnp.maximum(h, 0.0)
    onehot = (batch[None, :] == jnp.arange(num_graphs)[:, None]).astype(jnp.float32)
    pooled = (onehot @ h) / jnp.maximum(onehot.sum(axis=1, keepdims=True), 1.0)
    return pooled @ params["lin"]["W"] + params["lin"]["b"]


# ----------------------------------- main -----------------------------------


if __name__ == "__main__":
    input_channels, hidden_channels, output_channels = 4, 32, 3
    num_nodes, num_graphs = 8, 2

    key = jax.random.PRNGKey(0)
    k_param, k_x = jax.random.split(key)
    params = init_gcn_params(k_param, input_channels, hidden_channels,
                             output_channels)

    # Node features (N, C)
    x = jax.random.normal(k_x, (num_nodes, input_channels), jnp.float32)

    # Two 4-node ring graphs (undirected -> both directions listed).
    def ring_edges(offset, n):
        src, dst = [], []
        for i in range(n):
            j = (i + 1) % n
            src += [offset + i, offset + j]
            dst += [offset + j, offset + i]
        return src, dst

    s0, d0 = ring_edges(0, 4)
    s1, d1 = ring_edges(4, 4)
    edge_index = jnp.array([s0 + s1, d0 + d1], dtype=jnp.int32)

    # batch assignment: nodes 0..3 -> graph 0, nodes 4..7 -> graph 1
    batch = jnp.array([0, 0, 0, 0, 1, 1, 1, 1], dtype=jnp.int32)

    out = gcn_forward(params, x, edge_index=edge_index, batch=batch,
                      num_graphs=num_graphs)
    out = jax.block_until_ready(out)

    assert out.shape == (num_graphs, output_channels)
    assert bool(jnp.all(jnp.isfinite(out)))

    ref = _reference_forward(params, x, edge_index, batch, num_graphs)
    max_err = float(jnp.max(jnp.abs(out - ref)))
    assert max_err < 1e-1, f"mismatch vs reference: max abs err {max_err}"

    print("KERNEL_OK")
</pallas_src>

<mosaic_0001>
module attributes {stable_mosaic.version = 11 : i64} {
  func.func @_fused_gcn_kernel(%arg0: i32, %arg1: i32, %arg2: i32, %arg3: memref<128x128xbf16, #tpu.memory_space<vmem>>, %arg4: memref<128x128xbf16, #tpu.memory_space<vmem>>, %arg5: memref<3x128x256xbf16, #tpu.memory_space<vmem>>, %arg6: memref<3x1x256xf32, #tpu.memory_space<vmem>>, %arg7: memref<8x128xbf16, #tpu.memory_space<vmem>>, %arg8: memref<128x128xbf16, #tpu.memory_space<vmem>>, %arg9: memref<1x128xf32, #tpu.memory_space<vmem>>, %arg10: memref<8x128xf32, #tpu.memory_space<vmem>>, %arg11: memref<2x128x256xbf16, #tpu.memory_space<vmem>>, %arg12: memref<128x128xf32, #tpu.memory_space<vmem>>, %arg13: memref<8x128xf32, #tpu.memory_space<vmem>>) attributes {dimension_semantics = [#tpu.dimension_semantics<arbitrary>, #tpu.dimension_semantics<arbitrary>, #tpu.dimension_semantics<arbitrary>], iteration_bounds = array<i64: 3, 1, 1>, scalar_prefetch = 0 : i64, scratch_operands = 3 : i64, tpu.core_type = #tpu.core_type<tc>, window_params = [{pipeline_mode = #tpu.pipeline_mode<synchronous>, transform_indices = @transform_0, window_bounds = array<i64: 128, 128>}, {pipeline_mode = #tpu.pipeline_mode<synchronous>, transform_indices = @transform_1, window_bounds = array<i64: 128, 128>}, {pipeline_mode = #tpu.pipeline_mode<synchronous>, transform_indices = @transform_2, window_bounds = array<i64: 3, 128, 256>}, {pipeline_mode = #tpu.pipeline_mode<synchronous>, transform_indices = @transform_3, window_bounds = array<i64: 3, 1, 256>}, {transform_indices = @transform_4, window_bounds = array<i64: 8, 128>}, {pipeline_mode = #tpu.pipeline_mode<synchronous>, transform_indices = @transform_5, window_bounds = array<i64: 128, 128>}, {pipeline_mode = #tpu.pipeline_mode<synchronous>, transform_indices = @transform_6, window_bounds = array<i64: 1, 128>}, {pipeline_mode = #tpu.pipeline_mode<synchronous>, transform_indices = @transform_7, window_bounds = array<i64: 8, 128>}]} {
    %c2_i32 = arith.constant 2 : i32
    %c0_i32 = arith.constant 0 : i32
    %0 = arith.cmpi eq, %c2_i32, %c0_i32 : i32
    %c1_i32 = arith.constant 1 : i32
    %1 = arith.select %0, %c1_i32, %c2_i32 : i32
    %2 = arith.remsi %arg0, %1 : i32
    %c0_i32_0 = arith.constant 0 : i32
    %3 = arith.cmpi ne, %2, %c0_i32_0 : i32
    %c0_i32_1 = arith.constant 0 : i32
    %4 = arith.cmpi slt, %2, %c0_i32_1 : i32
    %c0_i32_2 = arith.constant 0 : i32
    %5 = arith.cmpi slt, %1, %c0_i32_2 : i32
    %6 = arith.xori %4, %5 : i1
    %7 = arith.andi %6, %3 : i1
    %8 = arith.addi %2, %1 : i32
    %9 = arith.select %7, %8, %2 : i32
    %c1_i32_3 = arith.constant 1 : i32
    %10 = arith.addi %arg0, %c1_i32_3 : i32
    %c2_i32_4 = arith.constant 2 : i32
    %c0_i32_5 = arith.constant 0 : i32
    %11 = arith.cmpi eq, %c2_i32_4, %c0_i32_5 : i32
    %c1_i32_6 = arith.constant 1 : i32
    %12 = arith.select %11, %c1_i32_6, %c2_i32_4 : i32
    %13 = arith.remsi %10, %12 : i32
    %c0_i32_7 = arith.constant 0 : i32
    %14 = arith.cmpi ne, %13, %c0_i32_7 : i32
    %c0_i32_8 = arith.constant 0 : i32
    %15 = arith.cmpi slt, %13, %c0_i32_8 : i32
    %c0_i32_9 = arith.constant 0 : i32
    %16 = arith.cmpi slt, %12, %c0_i32_9 : i32
    %17 = arith.xori %15, %16 : i1
    %18 = arith.andi %17, %14 : i1
    %19 = arith.addi %13, %12 : i32
    %20 = arith.select %18, %19, %13 : i32
    %c0_i32_10 = arith.constant 0 : i32
    %21 = arith.cmpi eq, %arg0, %c0_i32_10 : i32
    %c0_i32_11 = arith.constant 0 : i32
    %22 = arith.cmpi eq, %arg1, %c0_i32_11 : i32
    %23 = arith.andi %21, %22 : i1
    %c0_i32_12 = arith.constant 0 : i32
    %24 = arith.cmpi eq, %arg2, %c0_i32_12 : i32
    %25 = arith.andi %23, %24 : i1
    %26 = arith.extui %25 : i1 to i32
    %c0_i32_13 = arith.constant 0 : i32
    %27 = arith.cmpi ne, %26, %c0_i32_13 : i32
    scf.if %27 {
      %c0_27 = arith.constant 0 : index
      %c0_28 = arith.constant 0 : index
      %c0_29 = arith.constant 0 : index
      %56 = vector.load %arg5[%c0_27, %c0_28, %c0_29] : memref<3x128x256xbf16, #tpu.memory_space<vmem>>, vector<1x128x256xbf16>
      %57 = vector.shape_cast %56 : vector<1x128x256xbf16> to vector<128x256xbf16>
      %c0_30 = arith.constant 0 : index
      %c0_31 = arith.constant 0 : index
      %c0_32 = arith.constant 0 : index
      %58 = vector.load %arg6[%c0_30, %c0_31, %c0_32] : memref<3x1x256xf32, #tpu.memory_space<vmem>>, vector<1x1x256xf32>
      %59 = vector.shape_cast %58 : vector<1x1x256xf32> to vector<1x256xf32>
      %c0_i32_33 = arith.constant 0 : i32
      %c1_i32_34 = arith.constant 1 : i32
      %60 = arith.muli %c0_i32_33, %c1_i32_34 : i32
      %c0_i32_35 = arith.constant 0 : i32
      %61 = arith.addi %c0_i32_35, %60 : i32
      %c128_i32_36 = arith.constant 128 : i32
      %62 = arith.muli %61, %c128_i32_36 : i32
      %63 = tpu.assume_multiple %62, 128 : i32
      %64 = arith.index_cast %63 : i32 to index
      %c0_37 = arith.constant 0 : index
      %65 = vector.load %arg4[%64, %c0_37] : memref<128x128xbf16, #tpu.memory_space<vmem>>, vector<128x128xbf16>
      %cst_38 = arith.constant dense<0.000000e+00> : vector<128x256xf32>
      %66 = tpu.matmul %65, %57, %cst_38 {dimension_numbers = #tpu.dot_dimension_numbers<[1], [0], [0], [1], [0, 0, 1, 1], [], []>} : vector<128x128xbf16>, vector<128x256xbf16>, vector<128x256xf32> -> vector<128x256xf32>
      %67 = vector.broadcast %59 : vector<1x256xf32> to vector<128x256xf32>
      %68 = arith.addf %66, %67 : vector<128x256xf32>
      %69 = arith.truncf %68 : vector<128x256xf32> to vector<128x256xbf16>
      %c0_39 = arith.constant 0 : index
      %70 = arith.index_cast %63 : i32 to index
      %c0_40 = arith.constant 0 : index
      %71 = vector.load %arg11[%c0_39, %70, %c0_40] : memref<2x128x256xbf16, #tpu.memory_space<vmem>>, vector<1x128x256xbf16>
      %72 = vector.shape_cast %71 : vector<1x128x256xbf16> to vector<128x256xbf16>
      %73 = vector.shape_cast %69 : vector<128x256xbf16> to vector<1x128x256xbf16>
      tpu.vector_store %arg11[%c0_39, %70, %c0_40], %73 {strides = array<i32>} : memref<2x128x256xbf16, #tpu.memory_space<vmem>>, vector<1x128x256xbf16>,
      %c1_i32_41 = arith.constant 1 : i32
    } else {
    }
    %c2_i32_14 = arith.constant 2 : i32
    %28 = arith.cmpi eq, %arg0, %c2_i32_14 : i32
    %c0_i32_15 = arith.constant 0 : i32
    %29 = arith.cmpi eq, %arg1, %c0_i32_15 : i32
    %30 = arith.andi %28, %29 : i1
    %c0_i32_16 = arith.constant 0 : i32
    %31 = arith.cmpi eq, %arg2, %c0_i32_16 : i32
    %32 = arith.andi %30, %31 : i1
    %33 = arith.extui %32 : i1 to i32
    %c0_i32_17 = arith.constant 0 : i32
    %34 = arith.cmpi ne, %33, %c0_i32_17 : i32
    scf.if %34 {
      %cst_27 = arith.constant 0.000000e+00 : f32
      %56 = vector.broadcast %cst_27 : f32 to vector<8x128xf32>
      %c0_28 = arith.constant 0 : index
      %c0_29 = arith.constant 0 : index
      %57 = vector.load %arg13[%c0_28, %c0_29] : memref<8x128xf32, #tpu.memory_space<vmem>>, vector<8x128xf32>
      tpu.vector_store %arg13[%c0_28, %c0_29], %56 {strides = array<i32>} : memref<8x128xf32, #tpu.memory_space<vmem>>, vector<8x128xf32>,
    } else {
    }
    %c128_i32 = arith.constant 128 : i32
    %35 = arith.muli %arg1, %c128_i32 : i32
    %36 = tpu.assume_multiple %35, 128 : i32
    %c0_i32_18 = arith.constant 0 : i32
    %37 = arith.cmpi eq, %arg2, %c0_i32_18 : i32
    %38 = arith.extui %37 : i1 to i32
    %c0_i32_19 = arith.constant 0 : i32
    %39 = arith.cmpi ne, %38, %c0_i32_19 : i32
    scf.if %39 {
      %56 = arith.index_cast %9 : i32 to index
      %57 = arith.index_cast %36 : i32 to index
      %c128 = arith.constant 128 : index
      %58 = vector.load %arg11[%56, %57, %c128] : memref<2x128x256xbf16, #tpu.memory_space<vmem>>, vector<1x128x128xbf16>
      %59 = vector.shape_cast %58 : vector<1x128x128xbf16> to vector<128x128xbf16>
      %60 = arith.extf %59 : vector<128x128xbf16> to vector<128x128xf32>
      %c0_27 = arith.constant 0 : index
      %c0_28 = arith.constant 0 : index
      %61 = vector.load %arg12[%c0_27, %c0_28] : memref<128x128xf32, #tpu.memory_space<vmem>>, vector<128x128xf32>
      tpu.vector_store %arg12[%c0_27, %c0_28], %60 {strides = array<i32>} : memref<128x128xf32, #tpu.memory_space<vmem>>, vector<128x128xf32>,
    } else {
    }
    %c128_i32_20 = arith.constant 128 : i32
    %40 = arith.muli %arg2, %c128_i32_20 : i32
    %41 = tpu.assume_multiple %40, 128 : i32
    %42 = arith.index_cast %36 : i32 to index
    %43 = arith.index_cast %41 : i32 to index
    %44 = vector.load %arg3[%42, %43] : memref<128x128xbf16, #tpu.memory_space<vmem>>, vector<128x128xbf16>
    %45 = arith.index_cast %9 : i32 to index
    %46 = arith.index_cast %41 : i32 to index
    %c0 = arith.constant 0 : index
    %47 = vector.load %arg11[%45, %46, %c0] : memref<2x128x256xbf16, #tpu.memory_space<vmem>>, vector<1x128x128xbf16>
    %48 = vector.shape_cast %47 : vector<1x128x128xbf16> to vector<128x128xbf16>
    %c0_21 = arith.constant 0 : index
    %c0_22 = arith.constant 0 : index
    %49 = vector.load %arg12[%c0_21, %c0_22] : memref<128x128xf32, #tpu.memory_space<vmem>>, vector<128x128xf32>
    %cst = arith.constant dense<0.000000e+00> : vector<128x128xf32>
    %50 = tpu.matmul %44, %48, %cst {dimension_numbers = #tpu.dot_dimension_numbers<[1], [0], [0], [1], [0, 0, 1, 1], [], []>} : vector<128x128xbf16>, vector<128x128xbf16>, vector<128x128xf32> -> vector<128x128xf32>
    %51 = arith.addf %49, %50 : vector<128x128xf32>
    %c0_23 = arith.constant 0 : index
    %c0_24 = arith.constant 0 : index
    %52 = vector.load %arg12[%c0_23, %c0_24] : memref<128x128xf32, #tpu.memory_space<vmem>>, vector<128x128xf32>
    tpu.vector_store %arg12[%c0_23, %c0_24], %51 {strides = array<i32>} : memref<128x128xf32, #tpu.memory_space<vmem>>, vector<128x128xf32>,
    %c0_i32_25 = arith.constant 0 : i32
    %53 = arith.cmpi eq, %arg2, %c0_i32_25 : i32
    %54 = arith.extui %53 : i1 to i32
    %c0_i32_26 = arith.constant 0 : i32
    %55 = arith.cmpi ne, %54, %c0_i32_26 : i32
    scf.if %55 {
      %c0_27 = arith.constant 0 : index
      %c0_28 = arith.constant 0 : index
      %56 = vector.load %arg12[%c0_27, %c0_28] : memref<128x128xf32, #tpu.memory_space<vmem>>, vector<128x128xf32>
      %c2_i32_29 = arith.constant 2 : i32
      %57 = arith.cmpi slt, %arg0, %c2_i32_29 : i32
      %58 = arith.extui %57 : i1 to i32
      %c0_i32_30 = arith.constant 0 : i32
      %59 = arith.cmpi ne, %58, %c0_i32_30 : i32
      scf.if %59 {
        %cst_33 = arith.constant 0.000000e+00 : f32
        %63 = vector.broadcast %cst_33 : f32 to vector<128x128xf32>
        %64 = arith.maximumf %56, %63 : vector<128x128xf32>
        %65 = arith.truncf %64 : vector<128x128xf32> to vector<128x128xbf16>
        %c1_i32_34 = arith.constant 1 : i32
        %66 = arith.addi %arg0, %c1_i32_34 : i32
        %67 = arith.index_cast %66 : i32 to index
        %c0_35 = arith.constant 0 : index
        %c0_36 = arith.constant 0 : index
        %68 = vector.load %arg5[%67, %c0_35, %c0_36] : memref<3x128x256xbf16, #tpu.memory_space<vmem>>, vector<1x128x256xbf16>
        %69 = vector.shape_cast %68 : vector<1x128x256xbf16> to vector<128x256xbf16>
        %cst_37 = arith.constant dense<0.000000e+00> : vector<128x256xf32>
        %70 = tpu.matmul %65, %69, %cst_37 {dimension_numbers = #tpu.dot_dimension_numbers<[1], [0], [0], [1], [0, 0, 1, 1], [], []>} : vector<128x128xbf16>, vector<128x256xbf16>, vector<128x256xf32> -> vector<128x256xf32>
        %71 = arith.index_cast %66 : i32 to index
        %c0_38 = arith.constant 0 : index
        %c0_39 = arith.constant 0 : index
        %72 = vector.load %arg6[%71, %c0_38, %c0_39] : memref<3x1x256xf32, #tpu.memory_space<vmem>>, vector<1x1x256xf32>
        %73 = vector.shape_cast %72 : vector<1x1x256xf32> to vector<1x256xf32>
        %74 = vector.broadcast %73 : vector<1x256xf32> to vector<128x256xf32>
        %75 = arith.addf %70, %74 : vector<128x256xf32>
        %76 = arith.truncf %75 : vector<128x256xf32> to vector<128x256xbf16>
        %77 = arith.index_cast %20 : i32 to index
        %78 = arith.index_cast %36 : i32 to index
        %c0_40 = arith.constant 0 : index
        %79 = vector.load %arg11[%77, %78, %c0_40] : memref<2x128x256xbf16, #tpu.memory_space<vmem>>, vector<1x128x256xbf16>
        %80 = vector.shape_cast %79 : vector<1x128x256xbf16> to vector<128x256xbf16>
        %81 = vector.shape_cast %76 : vector<128x256xbf16> to vector<1x128x256xbf16>
        tpu.vector_store %arg11[%77, %78, %c0_40], %81 {strides = array<i32>} : memref<2x128x256xbf16, #tpu.memory_space<vmem>>, vector<1x128x256xbf16>,
      } else {
      }
      %c2_i32_31 = arith.constant 2 : i32
      %60 = arith.cmpi eq, %arg0, %c2_i32_31 : i32
      %61 = arith.extui %60 : i1 to i32
      %c0_i32_32 = arith.constant 0 : i32
      %62 = arith.cmpi ne, %61, %c0_i32_32 : i32
      scf.if %62 {
        %c0_33 = arith.constant 0 : index
        %c0_34 = arith.constant 0 : index
        %63 = vector.load %arg13[%c0_33, %c0_34] : memref<8x128xf32, #tpu.memory_space<vmem>>, vector<8x128xf32>
        %c0_35 = arith.constant 0 : index
        %c0_36 = arith.constant 0 : index
        %64 = vector.load %arg7[%c0_35, %c0_36] : memref<8x128xbf16, #tpu.memory_space<vmem>>, vector<8x128xbf16>
        %65 = arith.truncf %56 : vector<128x128xf32> to vector<128x128xbf16>
        %cst_37 = arith.constant dense<0.000000e+00> : vector<8x128xf32>
        %66 = tpu.matmul %64, %65, %cst_37 {dimension_numbers = #tpu.dot_dimension_numbers<[1], [0], [0], [1], [0, 0, 1, 1], [], []>} : vector<8x128xbf16>, vector<128x128xbf16>, vector<8x128xf32> -> vector<8x128xf32>
        %67 = arith.addf %63, %66 : vector<8x128xf32>
        %c0_38 = arith.constant 0 : index
        %c0_39 = arith.constant 0 : index
        %68 = vector.load %arg13[%c0_38, %c0_39] : memref<8x128xf32, #tpu.memory_space<vmem>>, vector<8x128xf32>
        tpu.vector_store %arg13[%c0_38, %c0_39], %67 {strides = array<i32>} : memref<8x128xf32, #tpu.memory_space<vmem>>, vector<8x128xf32>,
        %c0_i32_40 = arith.constant 0 : i32
        %69 = arith.cmpi eq, %arg1, %c0_i32_40 : i32
        %70 = arith.extui %69 : i1 to i32
        %c0_i32_41 = arith.constant 0 : i32
        %71 = arith.cmpi ne, %70, %c0_i32_41 : i32
        scf.if %71 {
          %c0_42 = arith.constant 0 : index
          %c0_43 = arith.constant 0 : index
          %72 = vector.load %arg13[%c0_42, %c0_43] : memref<8x128xf32, #tpu.memory_space<vmem>>, vector<8x128xf32>
          %73 = arith.truncf %72 : vector<8x128xf32> to vector<8x128xbf16>
          %c0_44 = arith.constant 0 : index
          %c0_45 = arith.constant 0 : index
          %74 = vector.load %arg8[%c0_44, %c0_45] : memref<128x128xbf16, #tpu.memory_space<vmem>>, vector<128x128xbf16>
          %cst_46 = arith.constant dense<0.000000e+00> : vector<8x128xf32>
          %75 = tpu.matmul %73, %74, %cst_46 {dimension_numbers = #tpu.dot_dimension_numbers<[1], [0], [0], [1], [0, 0, 1, 1], [], []>} : vector<8x128xbf16>, vector<128x128xbf16>, vector<8x128xf32> -> vector<8x128xf32>
          %c0_47 = arith.constant 0 : index
          %c0_48 = arith.constant 0 : index
          %76 = vector.load %arg9[%c0_47, %c0_48] : memref<1x128xf32, #tpu.memory_space<vmem>>, vector<1x128xf32>
          %77 = vector.broadcast %76 : vector<1x128xf32> to vector<8x128xf32>
          %78 = arith.addf %75, %77 : vector<8x128xf32>
          %c0_49 = arith.constant 0 : index
          %c0_50 = arith.constant 0 : index
          %79 = vector.load %arg10[%c0_49, %c0_50] : memref<8x128xf32, #tpu.memory_space<vmem>>, vector<8x128xf32>
          tpu.vector_store %arg10[%c0_49, %c0_50], %78 {strides = array<i32>} : memref<8x128xf32, #tpu.memory_space<vmem>>, vector<8x128xf32>,
        } else {
        }
      } else {
      }
    } else {
    }
    return
  }
  func.func @transform_0(%arg0: i32, %arg1: i32, %arg2: i32) -> (i32, i32) {
    %c0_i32 = arith.constant 0 : i32
    %c0_i32_0 = arith.constant 0 : i32
    %c0_i32_1 = arith.constant 0 : i32
    return %c0_i32, %c0_i32_0 : i32, i32
  }
  func.func @transform_1(%arg0: i32, %arg1: i32, %arg2: i32) -> (i32, i32) {
    %c0_i32 = arith.constant 0 : i32
    %c0_i32_0 = arith.constant 0 : i32
    %c0_i32_1 = arith.constant 0 : i32
    return %c0_i32, %c0_i32_0 : i32, i32
  }
  func.func @transform_2(%arg0: i32, %arg1: i32, %arg2: i32) -> (i32, i32, i32) {
    %c0_i32 = arith.constant 0 : i32
    %c0_i32_0 = arith.constant 0 : i32
    %c0_i32_1 = arith.constant 0 : i32
    %c0_i32_2 = arith.constant 0 : i32
    return %c0_i32, %c0_i32_0, %c0_i32_1 : i32, i32, i32
  }
  func.func @transform_3(%arg0: i32, %arg1: i32, %arg2: i32) -> (i32, i32, i32) {
    %c0_i32 = arith.constant 0 : i32
    %c0_i32_0 = arith.constant 0 : i32
    %c0_i32_1 = arith.constant 0 : i32
    %c0_i32_2 = arith.constant 0 : i32
    return %c0_i32, %c0_i32_0, %c0_i32_1 : i32, i32, i32
  }
  func.func @transform_4(%arg0: i32, %arg1: i32, %arg2: i32) -> (i32, i32) {
    %c0_i32 = arith.constant 0 : i32
    %c0_i32_0 = arith.constant 0 : i32
    return %c0_i32, %arg1 : i32, i32
  }
  func.func @transform_5(%arg0: i32, %arg1: i32, %arg2: i32) -> (i32, i32) {
    %c0_i32 = arith.constant 0 : i32
    %c0_i32_0 = arith.constant 0 : i32
    %c0_i32_1 = arith.constant 0 : i32
    return %c0_i32, %c0_i32_0 : i32, i32
  }
  func.func @transform_6(%arg0: i32, %arg1: i32, %arg2: i32) -> (i32, i32) {
    %c0_i32 = arith.constant 0 : i32
    %c0_i32_0 = arith.constant 0 : i32
    %c0_i32_1 = arith.constant 0 : i32
    return %c0_i32, %c0_i32_0 : i32, i32
  }
  func.func @transform_7(%arg0: i32, %arg1: i32, %arg2: i32) -> (i32, i32) {
    %c0_i32 = arith.constant 0 : i32
    %c0_i32_0 = arith.constant 0 : i32
    %c0_i32_1 = arith.constant 0 : i32
    return %c0_i32, %c0_i32_0 : i32, i32
  }
}

</mosaic_0001>

<bundles_post_ra>
// kernel: tpu_custom_call.1
= control target key start
LH: loop header
LB: loop body
LE: loop exit
PB: predicated region body
PF: predicated region fallthrough
CT: control target
= control target key end

     0   :  { %12 = vsyncpa [#allocation6], 0  ;;  %s2676_s0 = inlined_call_operand.hbm [shape: bf16[128,128], index: 0, kind: input, shape index: {}]   ;;  %s2677_s1 = inlined_call_operand.hbm [shape: bf16[128,128], index: 1, kind: input, shape index: {}]   ;;  %s2678_s2 = inlined_call_operand.hbm [shape: bf16[3,128,256], index: 2, kind: input, shape index: {}]   ;;  %s2679_s3 = inlined_call_operand.vmem [shape: f32[3,1,256], index: 3, kind: input, shape index: {}]   ;;  %s2680_s4 = inlined_call_operand.vmem [shape: bf16[8,128], index: 4, kind: input, shape index: {}]   ;;  %s2681_s5 = inlined_call_operand.hbm [shape: bf16[128,128], index: 5, kind: input, shape index: {}]   ;;  %s2682_s6 = inlined_call_operand.vmem [shape: f32[1,128], index: 6, kind: input, shape index: {}]   ;;  %s2683_s7 = inlined_call_operand.hbm [shape: f32[8,128], index: 7, kind: output, shape index: {}]  }
   0x1   :  { %13 = vsyncpa [#allocation9], 0 }
   0x2   :  { %14 = vsyncpa [#allocation12], 0 }
   0x3   :  { %15 = vsyncpa [#allocation7], 0  ;;  %s2252_s24 = smov 0   ;;  %s2254_s25 = smov 0  }
   0x4   :  { %s2256_s26 = smov 0  }
   0x5 LB: > { %s2687_s27 = sadd.s32 4294967295, %s2196_s26   ;;  %p1597_p0 = scmp.ge.s32.totalorder %s2196_s26, 1  ;;  %s2196_s26 = sphi %s2256_s26, %s21_s26   ;;  %s2192_s25 = sphi %s2254_s25, %s2700_s25   ;;  %s2188_s24 = sphi %s2252_s24, %s2699_s24  }
   0x6   : > { %p218_p1 = scmp.lt.s32.totalorder %s2196_s26, 4  ;;  %p2272_p2 = scmp.eq.s32.totalorder %s2687_s27, 0 }
   0x7   : > { %s2198_s30 = smov [#allocation8]   ;;  %s40_s10 = sadd.s32 1, %s2192_s25 }
   0x8   : > { %s2689_s28 = scalar_select %p2272_p2, 1, 0 }
   0x9   : > { %p2276_p3 = pnand %p1597_p0, %p218_p1  ;;  %s243_s8 = sshll.u32 %s2198_s30, 4  ;;  %s2280_s8 = int_to_ptr.vmem [resolvable:$true] %s243_s8 }
   0xa   : > { %p2291_p6 = scmp.ge.s32.totalorder %s40_s10, 3  ;;  %s2199_s12 = smov [#allocation5]  }
   0xb   : > { %s2690_s29 = scalar_select %p2276_p3, 1, 0 }
   0xc   : > { %p1887_p4 = pneg %p2276_p3  ;;  %s230_s13 = sshll.u32 %s2199_s12, 4  ;;  %s231_s13 = int_to_ptr.vmem [resolvable:$true] %s230_s13 }
   0xd   : > { %s2020_s16 = scalar_lea.hbm %s2677_s1, 1024 }
   0xe   : > { %p2286_p5 = pnand %p2272_p2, %p1887_p4  ;;  %p2021_p7 = scmp.ne.s32.totalorder %s2677_s1, %s2020_s16 }
   0xf   : > { %p2027_p11 = scmp.lt.u32.totalorder %s2020_s16, %s2677_s1 }
  0x10   : > { %p2303_p8 = pneg %p2286_p5 }
  0x12   : > { %p2023_p9 = pnand %p2303_p8, %p2021_p7 }
  0x14   : > { %p2024_p10 = pneg %p2023_p9 }
  0x16   : > { %p2029_p12 = pnand %p2027_p11, %p2024_p10 }
  0x18   : > { %2032 = shalt.err (!%p2029_p12)
}
  0x19   : > { %s2033_s22 = scalar_lea.vmem %s2280_s8, 1024  ;;  %p2041_p4 = scmp.lt.s32.totalorder %s2280_s8, %s2280_s8 }
  0x1a   : > { %p2034_p13 = scmp.ne.s32.totalorder %s2280_s8, %s2033_s22  ;;  %p2042_p2 = scmp.lt.s32.totalorder %s2033_s22, %s2033_s22 }
  0x1c   : > { %p2036_p0 = pnand %p2034_p13, %p2303_p8  ;;  %p2043_p7 = por %p2042_p2, %p2041_p4 }
  0x1e   : > { %p2037_p1 = pneg %p2036_p0 }
  0x20   : > { %p2044_p9 = pnand %p2043_p7, %p2037_p1 }
  0x22   : > { %2047 = shalt.err (!%p2044_p9)
}
  0x23   : > { %s2688_s23 = smov 64   ;;  %s2201_s30 = smov 4  }
  0x24   : > { %1893 = dma.hbm_to_vmem [thread:$0]  (!%p2286_p5), %s2677_s1, 1024, %s2280_s8, [#allocation9], %s2688_s23, %s2688_s23, %s2201_s30  }
  0x25   : > { %s2702_s10 = smov (%p2291_p6, %s40_s10), 0  ;;  %s2048_s17 = scalar_lea.hbm %s2676_s0, 1024 }
  0x26   : > { %p2049_p2 = scmp.ne.s32.totalorder %s2676_s0, %s2048_s17  ;;  %p2055_p12 = scmp.lt.u32.totalorder %s2048_s17, %s2676_s0 }
  0x28   : > { %p2051_p10 = pnand %p2049_p2, %p2303_p8 }
  0x2a   : > { %p2052_p11 = pneg %p2051_p10 }
  0x2c   : > { %p2057_p13 = pnand %p2055_p12, %p2052_p11 }
  0x2e   : > { %2060 = shalt.err (!%p2057_p13)
}
  0x2f   : > { %s2061_s8 = scalar_lea.vmem %s231_s13, 1024  ;;  %p2069_p4 = scmp.lt.s32.totalorder %s231_s13, %s231_s13 }
  0x30   : > { %p2062_p6 = scmp.ne.s32.totalorder %s231_s13, %s2061_s8  ;;  %p2070_p7 = scmp.lt.s32.totalorder %s2061_s8, %s2061_s8 }
  0x32   : > { %p2064_p0 = pnand %p2062_p6, %p2303_p8  ;;  %p2071_p9 = por %p2070_p7, %p2069_p4 }
  0x34   : > { %p2065_p1 = pneg %p2064_p0 }
  0x36   : > { %p2072_p3 = pnand %p2071_p9, %p2065_p1 }
  0x38   : > { %2075 = shalt.err (!%p2072_p3)
}
  0x39   : > { %1890 = dma.hbm_to_vmem [thread:$0]  (!%p2286_p5), %s2676_s0, 1024, %s231_s13, [#allocation6], %s2688_s23, %s2688_s23, %s2201_s30  }
  0x3a   : > { %s2202_s14 = smov [#allocation10]   ;;  %s2076_s18 = scalar_lea.hbm %s2678_s2, 6144 }
  0x3b   : > { %s256_s15 = sshll.u32 %s2202_s14, 4  ;;  %p2077_p3 = scmp.ne.s32.totalorder %s2678_s2, %s2076_s18  ;;  %s257_s15 = int_to_ptr.vmem [resolvable:$true] %s256_s15 }
  0x3c   : > { %p2083_p11 = scmp.lt.u32.totalorder %s2076_s18, %s2678_s2 }
  0x3d   : > { %p2079_p2 = pnand %p2077_p3, %p2303_p8 }
  0x3f   : > { %p2080_p10 = pneg %p2079_p2 }
  0x41   : > { %p2085_p12 = pnand %p2083_p11, %p2080_p10 }
  0x43   : > { %2088 = shalt.err (!%p2085_p12)
}
  0x44   : > { %s2089_s13 = scalar_lea.vmem %s257_s15, 6144  ;;  %p2097_p1 = scmp.lt.s32.totalorder %s257_s15, %s257_s15 }
  0x45   : > { %p2090_p13 = scmp.ne.s32.totalorder %s257_s15, %s2089_s13  ;;  %p2098_p4 = scmp.lt.s32.totalorder %s2089_s13, %s2089_s13 }
  0x47   : > { %p2092_p6 = pnand %p2090_p13, %p2303_p8  ;;  %p2099_p7 = por %p2098_p4, %p2097_p1 }
  0x49   : > { %p2093_p0 = pneg %p2092_p6 }
  0x4b   : > { %p2100_p9 = pnand %p2099_p7, %p2093_p0 }
  0x4d   : > { %2103 = shalt.err (!%p2100_p9)
}
  0x4e   : > { %s2203_s11 = smov 128   ;;  %s2204_s12 = smov 8  }
  0x4f   : > { %1896 = dma.hbm_to_vmem [thread:$0]  (!%p2286_p5), %s2678_s2, 6144, %s257_s15, [#allocation9], %s2203_s11, %s2203_s11, %s2204_s12  }
  0x50   : > { %s2205_s17 = smov [#allocation11]   ;;  %s2104_s22 = scalar_lea.hbm %s2681_s5, 1024 }
  0x51   : > { %s279_s18 = sshll.u32 %s2205_s17, 4  ;;  %p2105_p3 = scmp.ne.s32.totalorder %s2681_s5, %s2104_s22  ;;  %s280_s18 = int_to_ptr.vmem [resolvable:$true] %s279_s18 }
  0x52   : > { %p2111_p11 = scmp.lt.u32.totalorder %s2104_s22, %s2681_s5 }
  0x53   : > { %p2107_p2 = pnand %p2105_p3, %p2303_p8 }
  0x55   : > { %p2108_p10 = pneg %p2107_p2 }
  0x57   : > { %p2113_p12 = pnand %p2111_p11, %p2108_p10 }
  0x59   : > { %2116 = shalt.err (!%p2113_p12)
}
  0x5a   : > { %s2117_s15 = scalar_lea.vmem %s280_s18, 1024  ;;  %p2125_p1 = scmp.lt.s32.totalorder %s280_s18, %s280_s18 }
  0x5b   : > { %p2118_p13 = scmp.ne.s32.totalorder %s280_s18, %s2117_s15  ;;  %p2126_p4 = scmp.lt.s32.totalorder %s2117_s15, %s2117_s15 }
  0x5d   : > { %p2120_p6 = pnand %p2118_p13, %p2303_p8  ;;  %p2127_p7 = por %p2126_p4, %p2125_p1 }
  0x5f   : > { %p2121_p0 = pneg %p2120_p6 }
  0x61   : > { %p2128_p9 = pnand %p2127_p7, %p2121_p0 }
  0x63   : > { %2131 = shalt.err (!%p2128_p9)
}
  0x64   : > { %s2694_s11 = smov 64   ;;  %p2695_p3 = scmp.ne.s32.totalorder %s2690_s29, 0 }
  0x65   : > { %1899 = dma.hbm_to_vmem [thread:$0]  (!%p2286_p5), %s2681_s5, 1024, %s280_s18, [#allocation12], %s2694_s11, %s2694_s11, %s2201_s30  }
  0x66   : > { %298 = sbr.rel (%p2695_p3) target bundleno = 1401 (0x579), region = 48  ;;  %p2696_p8 = scmp.ne.s32.totalorder (!%p2695_p3), %s2689_s28, 0 }
  0x6d   : > { %2171 = dma.done.wait (%p2696_p8), [#allocation6], 1024  }
  0x6e   : > { %2173 = vsyncadd (%p2696_p8), [#allocation6], 4294966272 }
  0x6f   : > { %2175 = dma.done.wait (%p2696_p8), [#allocation9], 7168  }
  0x70   : > { %2177 = vsyncadd (%p2696_p8), [#allocation9], 4294960128 }
  0x71   : > { %2179 = dma.done.wait (%p2696_p8), [#allocation12], 1024  }
  0x72   : > { %2181 = vsyncadd (%p2696_p8), [#allocation12], 4294966272  ;;  %p341_p5 = scmp.lt.s32.totalorder %s2188_s24, 0  ;;  %s342_s29 = ssub.s32 0, %s2188_s24 }
  0x73   : > { %s1608_s9 = smin.u32 %s2188_s24, %s342_s29  ;;  %s353_s19 = sadd.s32 1, %s2188_s24 }
  0x74   : > { %s344_s30 = sand.u32 1, %s1608_s9   ;;  %p354_p2 = scmp.lt.s32.totalorder %s353_s19, 0 }
  0x75   : > { %s345_s12 = ssub.s32 0, %s344_s30  ;;  %s355_s14 = ssub.s32 0, %s353_s19 }
  0x76   : > { %s2704_s12 = smov (!%p341_p5, %s345_s12), %s344_s30  ;;  %s1611_s16 = smin.u32 %s355_s14, %s353_s19 }
  0x77   : > { %p366_p10 = scmp.eq.s32.totalorder %s2188_s24, 0  ;;  %p1610_p11 = scmp.lt.s32.totalorder %s2704_s12, 0 }
  0x78   : > { %s351_s17 = sadd.s32 2, %s2704_s12  ;;  %s357_s28 = sand.u32 1, %s1611_s16   ;;  %v1948_v0 = vld [vmem:[#allocation10 + $0x4] ss:$8 sps:$4 sm:$0xff] (%p366_p10)   ;;  %v1950_v1 = vld [vmem:[#allocation10] ss:$8 sps:$4 sm:$0xff] (%p366_p10)   ;;  %v409_v25 = vlaneseq (%p366_p10) }
  0x79   : > { %s2706_s17 = smov (!%p1610_p11, %s351_s17), %s2704_s12  ;;  %s358_s18 = ssub.s32 0, %s357_s28  ;;  %v2206_v2 = vmov (%p366_p10), 0   ;;  %547 = vmatprep.subr.bf16.mxu0 (%p366_p10), %v1948_v0  ;;  %1819 = vmatprep.subr.bf16.mxu1 (%p366_p10), %v1948_v0  ;;  %v1951_v3 = vld [vmem:[#allocation10 + $0x14] ss:$8 sps:$4 sm:$0xff] (%p366_p10)   ;;  %v1953_v4 = vld [vmem:[#allocation10 + $0x10] ss:$8 sps:$4 sm:$0xff] (%p366_p10)  }
  0x7a   : > { %s2708_s18 = smov (!%p354_p2, %s358_s18), %s357_s28  ;;  %374 = sbr.rel (!%p366_p10) target bundleno = 399 (0x18f), region = 68 }
  0x7b   : > { %p1613_p12 = scmp.lt.s32.totalorder %s2708_s18, 0  ;;  %s364_s20 = sadd.s32 2, %s2708_s18  ;;  %579 = vmatprep.mubr.bf16.mxu0 (%p366_p10), %v2206_v2  ;;  %619 = vmatprep.mubr.bf16.mxu1 (%p366_p10), %v2206_v2  ;;  %v1954_v5 = vld [vmem:[#allocation10 + $0x24] ss:$8 sps:$4 sm:$0xff] (%p366_p10)   ;;  %v1956_v6 = vld [vmem:[#allocation10 + $0x20] ss:$8 sps:$4 sm:$0xff] (%p366_p10)  }
  0x7c   : > { %548 = vmatpush1.bf16.msra.mxu0 (%p366_p10), %v1950_v1  ;;  %1827 = vmatpush1.bf16.msra.mxu1 (%p366_p10), %v1950_v1  ;;  %v1957_v7 = vld [vmem:[#allocation10 + $0x34] ss:$8 sps:$4 sm:$0xff] (%p366_p10)   ;;  %v1959_v8 = vld [vmem:[#allocation10 + $0x30] ss:$8 sps:$4 sm:$0xff] (%p366_p10)   ;;  %v1960_v9 = vld [vmem:[#allocation10 + $0x44] ss:$8 sps:$4 sm:$0xff] (%p366_p10)  }
  0x7d   : > { %s2710_s20 = smov (!%p1613_p12, %s364_s20), %s2708_s18  ;;  %549 = vmatprep.subr.bf16.mxu0 (%p366_p10), %v1951_v3  ;;  %1820 = vmatprep.subr.bf16.mxu1 (%p366_p10), %v1951_v3  ;;  %v1962_v10 = vld [vmem:[#allocation10 + $0x40] ss:$8 sps:$4 sm:$0xff] (%p366_p10)   ;;  %v1963_v11 = vld [vmem:[#allocation10 + $0x54] ss:$8 sps:$4 sm:$0xff] (%p366_p10)   ;;  %v1965_v12 = vld [vmem:[#allocation10 + $0x50] ss:$8 sps:$4 sm:$0xff] (%p366_p10)  }
  0x7e   : > { %v1966_v13 = vld [vmem:[#allocation10 + $0x64] ss:$8 sps:$4 sm:$0xff] (%p366_p10)   ;;  %v1968_v14 = vld [vmem:[#allocation10 + $0x60] ss:$8 sps:$4 sm:$0xff] (%p366_p10)   ;;  %v1969_v15 = vld [vmem:[#allocation10 + $0x74] ss:$8 sps:$4 sm:$0xff] (%p366_p10)  }
  0x7f   : > { %v1971_v16 = vld [vmem:[#allocation10 + $0x70] ss:$8 sps:$4 sm:$0xff] (%p366_p10)   ;;  %v1972_v17 = vld [vmem:[#allocation8] sm:$0xff] (%p366_p10)   ;;  %v1974_v19 = vld [vmem:[#allocation8 + $0x8] sm:$0xff] (%p366_p10)   ;;  %v410_v26 = vshrl.u32 (%p366_p10), %v409_v25, 7 }
  0x80   : > { %550 = vmatpush1.bf16.msra.mxu0 (%p366_p10), %v1953_v4  ;;  %1828 = vmatpush1.bf16.msra.mxu1 (%p366_p10), %v1953_v4  ;;  %v1973_v18 = vld [vmem:[#allocation8 + $0x20] sm:$0xff] (%p366_p10)   ;;  %v1975_v20 = vld [vmem:[#allocation8 + $0x28] sm:$0xff] (%p366_p10)   ;;  %v1976_v21 = vld [vmem:[#allocation8 + $0x10] sm:$0xff] (%p366_p10)  }
  0x81   : > { %551 = vmatprep.subr.bf16.mxu0 %v1954_v5  ;;  %1821 = vmatprep.subr.bf16.mxu1 %v1954_v5  ;;  %v1977_v22 = vld [vmem:[#allocation8 + $0x30] sm:$0xff]   ;;  %v1978_v23 = vld [vmem:[#allocation8 + $0x18] sm:$0xff]   ;;  %v411_v27 = vsub.s32 0, %v410_v26  ;;  %v415_v29 = vsub.s32 1, %v410_v26 }
  0x82   : > { %v1979_v24 = vld [vmem:[#allocation8 + $0x38] sm:$0xff]  }
  0x83   : > { %v391_v28 = vld [vmem:[%s2679_s3] sm:$0x3] }
  0x84   : > { %552 = vmatpush1.bf16.msra.mxu0 %v1956_v6  ;;  %1829 = vmatpush1.bf16.msra.mxu1 %v1956_v6  ;;  %v2425_v30 = vrot.slane %v391_v28, %v411_v27  ;;  %v2427_v33 = vrot.slane %v391_v28, %v415_v29 }
  0x85   : > { %553 = vmatprep.subr.bf16.mxu0 %v1957_v7  ;;  %1822 = vmatprep.subr.bf16.mxu1 %v1957_v7 }
  0x88   : > { %554 = vmatpush1.bf16.msra.mxu0 %v1959_v8  ;;  %1830 = vmatpush1.bf16.msra.mxu1 %v1959_v8 }
  0x89   : > { %555 = vmatprep.subr.bf16.mxu0 %v1960_v9  ;;  %1823 = vmatprep.subr.bf16.mxu1 %v1960_v9 }
  0x8c   : > { %556 = vmatpush1.bf16.msra.mxu0 %v1962_v10  ;;  %1831 = vmatpush1.bf16.msra.mxu1 %v1962_v10 }
  0x8d   : > { %557 = vmatprep.subr.bf16.mxu0 %v1963_v11  ;;  %1824 = vmatprep.subr.bf16.mxu1 %v1963_v11 }
  0x90   : > { %558 = vmatpush1.bf16.msra.mxu0 %v1965_v12  ;;  %1832 = vmatpush1.bf16.msra.mxu1 %v1965_v12 }
  0x91   : > { %559 = vmatprep.subr.bf16.mxu0 %v1966_v13  ;;  %1825 = vmatprep.subr.bf16.mxu1 %v1966_v13 }
  0x94   : > { %560 = vmatpush1.bf16.msra.mxu0 %v1968_v14  ;;  %1833 = vmatpush1.bf16.msra.mxu1 %v1968_v14 }
  0x95   : > { %561 = vmatprep.subr.bf16.mxu0 %v1969_v15  ;;  %1826 = vmatprep.subr.bf16.mxu1 %v1969_v15 }
  0x98   : > { %562 = vmatpush1.bf16.msra.mxu0 %v1971_v16  ;;  %1834 = vmatpush1.bf16.msra.mxu1 %v1971_v16 }
  0x9b   : > { %580 = vmatmul.mubr.bf16.vlgmr.msra.gmra.mrb[0].mxu0 %v1972_v17  ;;  %620 = vmatmul.mubr.bf16.vlgmr.msra.gmra.mrb[0].mxu1 %v1973_v18 }
  0x9c   : > { %589 = vmatprep.mubr.bf16.mxu0 %v2206_v2  ;;  %629 = vmatprep.mubr.bf16.mxu1 %v2206_v2 }
  0xa3   : > { %590 = vmatmul.mubr.bf16.gmra.mrb[4].mxu0 %v1974_v19  ;;  %630 = vmatmul.mubr.bf16.gmra.mrb[4].mxu1 %v1975_v20 }
  0xa4   : > { %599 = vmatprep.mubr.bf16.mxu0 %v2206_v2  ;;  %639 = vmatprep.mubr.bf16.mxu1 %v2206_v2 }
  0xab   : > { %600 = vmatmul.mubr.bf16.gmra.mrb[8].mxu0 %v1976_v21  ;;  %640 = vmatmul.mubr.bf16.gmra.mrb[8].mxu1 %v1977_v22 }
  0xac   : > { %609 = vmatprep.mubr.bf16.mxu0 %v2206_v2  ;;  %649 = vmatprep.mubr.bf16.mxu1 %v2206_v2 }
  0xb3   : > { %610 = vmatmul.mubr.bf16.gmra.mrb[12].mxu0 %v1978_v23  ;;  %650 = vmatmul.mubr.bf16.gmra.mrb[12].mxu1 %v1979_v24 }
 0x16e   : > { %v581_v31 = vpop.f32.mrb[0].mxu0  ;;  %v621_v32 = vpop.f32.mrb[0].mxu1 }
 0x16f   : > { %v583_v34 = vpop.f32.mrb[1].mxu0  ;;  %v623_v35 = vpop.f32.mrb[1].mxu1  ;;  %v582_v38 = vadd.f32 %v581_v31, %v2425_v30  ;;  %v622_v39 = vadd.f32 %v621_v32, %v2425_v30 }
 0x170   : > { %v585_v36 = vpop.f32.mrb[2].mxu0  ;;  %v625_v37 = vpop.f32.mrb[2].mxu1  ;;  %v584_v44 = vadd.f32 %v583_v34, %v2427_v33  ;;  %v624_v45 = vadd.f32 %v623_v35, %v2427_v33 }
 0x171   : > { %v586_v40 = vadd.f32 %v585_v36, %v2425_v30  ;;  %v626_v41 = vadd.f32 %v625_v37, %v2425_v30  ;;  %v587_v42 = vpop.f32.mrb[3].mxu0  ;;  %v627_v43 = vpop.f32.mrb[3].mxu1 }
 0x172   : > { %v588_v46 = vadd.f32 %v587_v42, %v2427_v33  ;;  %v628_v47 = vadd.f32 %v627_v43, %v2427_v33 }
 0x173   : > { %v660_v48 = vpack.c.bf16 %v586_v40, %v582_v38  ;;  %v668_v49 = vpack.c.bf16 %v626_v41, %v622_v39 }
 0x174   : > { %v661_v50 = vpack.c.bf16 %v588_v46, %v584_v44  ;;  %v669_v51 = vpack.c.bf16 %v628_v47, %v624_v45 }
 0x175   : > { %679 = vst [vmem:[#allocation2] sm:$0xff] %v660_v48  ;;  %687 = vst [vmem:[#allocation2 + $0x40] sm:$0xff] %v668_v49 }
 0x176   : > { %680 = vst [vmem:[#allocation2 + $0x8] sm:$0xff] %v661_v50  ;;  %688 = vst [vmem:[#allocation2 + $0x48] sm:$0xff] %v669_v51  ;;  %v591_v52 = vpop.f32.mrb[4].mxu0  ;;  %v631_v53 = vpop.f32.mrb[4].mxu1 }
 0x177   : > { %v593_v54 = vpop.f32.mrb[5].mxu0  ;;  %v633_v55 = vpop.f32.mrb[5].mxu1  ;;  %v592_v58 = vadd.f32 %v591_v52, %v2425_v30  ;;  %v632_v59 = vadd.f32 %v631_v53, %v2425_v30 }
 0x178   : > { %v595_v56 = vpop.f32.mrb[6].mxu0  ;;  %v635_v57 = vpop.f32.mrb[6].mxu1  ;;  %v594_v0 = vadd.f32 %v593_v54, %v2427_v33  ;;  %v634_v1 = vadd.f32 %v633_v55, %v2427_v33 }
 0x179   : > { %v596_v60 = vadd.f32 %v595_v56, %v2425_v30  ;;  %v636_v61 = vadd.f32 %v635_v57, %v2425_v30  ;;  %v597_v62 = vpop.f32.mrb[7].mxu0  ;;  %v637_v63 = vpop.f32.mrb[7].mxu1 }
 0x17a   : > { %v598_v2 = vadd.f32 %v597_v62, %v2427_v33  ;;  %v638_v3 = vadd.f32 %v637_v63, %v2427_v33 }
 0x17b   : > { %v662_v4 = vpack.c.bf16 %v596_v60, %v592_v58  ;;  %v670_v5 = vpack.c.bf16 %v636_v61, %v632_v59 }
 0x17c   : > { %v663_v6 = vpack.c.bf16 %v598_v2, %v594_v0  ;;  %v671_v7 = vpack.c.bf16 %v638_v3, %v634_v1 }
 0x17d   : > { %681 = vst [vmem:[#allocation2 + $0x10] sm:$0xff] %v662_v4  ;;  %689 = vst [vmem:[#allocation2 + $0x50] sm:$0xff] %v670_v5 }
 0x17e   : > { %682 = vst [vmem:[#allocation2 + $0x18] sm:$0xff] %v663_v6  ;;  %690 = vst [vmem:[#allocation2 + $0x58] sm:$0xff] %v671_v7  ;;  %v601_v8 = vpop.f32.mrb[8].mxu0  ;;  %v641_v9 = vpop.f32.mrb[8].mxu1 }
 0x17f   : > { %v603_v10 = vpop.f32.mrb[9].mxu0  ;;  %v643_v11 = vpop.f32.mrb[9].mxu1  ;;  %v602_v14 = vadd.f32 %v601_v8, %v2425_v30  ;;  %v642_v15 = vadd.f32 %v641_v9, %v2425_v30 }
 0x180   : > { %v605_v12 = vpop.f32.mrb[10].mxu0  ;;  %v645_v13 = vpop.f32.mrb[10].mxu1  ;;  %v604_v20 = vadd.f32 %v603_v10, %v2427_v33  ;;  %v644_v21 = vadd.f32 %v643_v11, %v2427_v33 }
 0x181   : > { %v606_v16 = vadd.f32 %v605_v12, %v2425_v30  ;;  %v646_v17 = vadd.f32 %v645_v13, %v2425_v30  ;;  %v607_v18 = vpop.f32.mrb[11].mxu0  ;;  %v647_v19 = vpop.f32.mrb[11].mxu1 }
 0x182   : > { %v608_v22 = vadd.f32 %v607_v18, %v2427_v33  ;;  %v648_v23 = vadd.f32 %v647_v19, %v2427_v33 }
 0x183   : > { %v664_v24 = vpack.c.bf16 %v606_v16, %v602_v14  ;;  %v672_v25 = vpack.c.bf16 %v646_v17, %v642_v15 }
 0x184   : > { %v665_v26 = vpack.c.bf16 %v608_v22, %v604_v20  ;;  %v673_v27 = vpack.c.bf16 %v648_v23, %v644_v21 }
 0x185   : > { %683 = vst [vmem:[#allocation2 + $0x20] sm:$0xff] %v664_v24  ;;  %691 = vst [vmem:[#allocation2 + $0x60] sm:$0xff] %v672_v25 }
 0x186   : > { %684 = vst [vmem:[#allocation2 + $0x28] sm:$0xff] %v665_v26  ;;  %692 = vst [vmem:[#allocation2 + $0x68] sm:$0xff] %v673_v27  ;;  %v611_v28 = vpop.f32.mrb[12].mxu0  ;;  %v651_v29 = vpop.f32.mrb[12].mxu1 }
 0x187   : > { %v613_v31 = vpop.f32.mrb[13].mxu0  ;;  %v653_v32 = vpop.f32.mrb[13].mxu1  ;;  %v612_v36 = vadd.f32 %v611_v28, %v2425_v30  ;;  %v652_v37 = vadd.f32 %v651_v29, %v2425_v30 }
 0x188   : > { %v615_v34 = vpop.f32.mrb[14].mxu0  ;;  %v655_v35 = vpop.f32.mrb[14].mxu1  ;;  %v614_v42 = vadd.f32 %v613_v31, %v2427_v33  ;;  %v654_v43 = vadd.f32 %v653_v32, %v2427_v33 }
 0x189   : > { %v616_v38 = vadd.f32 %v615_v34, %v2425_v30  ;;  %v656_v39 = vadd.f32 %v655_v35, %v2425_v30  ;;  %v617_v40 = vpop.f32.mrb[15].mxu0  ;;  %v657_v41 = vpop.f32.mrb[15].mxu1 }
 0x18a   : > { %v618_v44 = vadd.f32 %v617_v40, %v2427_v33  ;;  %v658_v45 = vadd.f32 %v657_v41, %v2427_v33 }
 0x18b   : > { %v666_v46 = vpack.c.bf16 %v616_v38, %v612_v36  ;;  %v674_v47 = vpack.c.bf16 %v656_v39, %v652_v37 }
 0x18c   : > { %v667_v48 = vpack.c.bf16 %v618_v44, %v614_v42  ;;  %v675_v49 = vpack.c.bf16 %v658_v45, %v654_v43 }
 0x18d   : > { %685 = vst [vmem:[#allocation2 + $0x30] sm:$0xff] %v666_v46  ;;  %693 = vst [vmem:[#allocation2 + $0x70] sm:$0xff] %v674_v47 }
 0x18e   : > { %686 = vst [vmem:[#allocation2 + $0x38] sm:$0xff] %v667_v48  ;;  %694 = vst [vmem:[#allocation2 + $0x78] sm:$0xff] %v675_v49 }
 0x18f PF: > { %p695_p13 = scmp.eq.s32.totalorder %s2188_s24, 2 }
 0x190   : > { %v2207_v30 = vmov (%p695_p13), 0.0  }
 0x191   : > { %701 = sbr.rel (!%p695_p13) target bundleno = 408 (0x198), region = 72  ;;  %702 = vst [vmem:[#allocation4] sm:$0xff] (%p695_p13), %v2207_v30 }
 0x198 PF: > { %s1710_s8 = sshll.u32 %s2706_s17, 7  ;;  %v1980_v50 = vld [vmem:[#allocation5] sm:$0xff]   ;;  %v1982_v59 = vld [vmem:[#allocation5 + $0x8] sm:$0xff]   ;;  %v1984_v61 = vld [vmem:[#allocation5 + $0x10] sm:$0xff]   ;;  %p1654_p6 = scmp.ge.s32.totalorder %s2188_s24, 2 }
 0x199   : > { %s2463_s13 = scalar_lea.vmem [#allocation2], %s1710_s8  ;;  %1763 = vmatprep.mubr.bf16.mxu0 %v1980_v50  ;;  %v1981_v52 = vld [vmem:[#allocation5 + $0x20] sm:$0xff]   ;;  %v1983_v60 = vld [vmem:[#allocation5 + $0x28] sm:$0xff]   ;;  %v1985_v62 = vld [vmem:[#allocation5 + $0x30] sm:$0xff]   ;;  %s1655_s15 = sshll.u32 (!%p1654_p6), %s2188_s24, 7 }
 0x19a   : > { %v785_v33 = vld [vmem:[%s2463_s13] sm:$0xff]  ;;  %v786_v51 = vld [vmem:[%s2463_s13 + $0x10] sm:$0xff]  ;;  %1771 = vmatprep.mubr.bf16.mxu1 %v1981_v52  ;;  %v715_v1 = vld [vmem:[%s2463_s13 + $0x18] sm:$0xff]  ;;  %s2517_s11 = scalar_lea.vmem (!%p1654_p6), [#allocation10], %s1655_s15  ;;  %s1672_s27 = sshll.u32 (!%p1654_p6), %s2188_s24, 1 }
 0x19b   : > { %1747 = vmatprep.subr.bf16.mxu0 %v785_v33  ;;  %1835 = vmatprep.subr.bf16.mxu1 %v785_v33  ;;  %v787_v53 = vld [vmem:[%s2463_s13 + $0x20] sm:$0xff]  ;;  %v788_v54 = vld [vmem:[%s2463_s13 + $0x30] sm:$0xff]  ;;  %v719_v2 = vld [vmem:[%s2463_s13 + $0x58] sm:$0xff]  ;;  %v724_v5 = vunpack.c.l.bf16 %v715_v1  ;;  %v725_v9 = vunpack.c.h.bf16 %v715_v1  ;;  %s1521_s9 = scalar_lea.vmem (!%p1654_p6), %s2679_s3, %s1672_s27  ;;  %s1712_s19 = sshll.u32 (!%p1654_p6), %s2710_s20, 7 }
 0x19c   : > { %1748 = vmatpush3.bf16.msra.mxu0 %v785_v33  ;;  %1843 = vmatpush3.bf16.msra.mxu1 %v785_v33  ;;  %v789_v55 = vld [vmem:[%s2463_s13 + $0x40] sm:$0xff]  ;;  %v790_v56 = vld [vmem:[%s2463_s13 + $0x50] sm:$0xff]  ;;  %v714_v3 = vld [vmem:[%s2463_s13 + $0x8] sm:$0xff]  ;;  %v732_v6 = vunpack.c.l.bf16 %v719_v2  ;;  %v733_v10 = vunpack.c.h.bf16 %v719_v2  ;;  %s2574_s30 = scalar_lea.vmem (!%p1654_p6), [#allocation2], %s1712_s19 }
 0x19d   : > { %1749 = vmatprep.subr.bf16.mxu0 %v786_v51  ;;  %1836 = vmatprep.subr.bf16.mxu1 %v786_v51  ;;  %v791_v57 = vld [vmem:[%s2463_s13 + $0x60] sm:$0xff]  ;;  %v792_v58 = vld [vmem:[%s2463_s13 + $0x70] sm:$0xff]  ;;  %v718_v4 = vld [vmem:[%s2463_s13 + $0x48] sm:$0xff]  ;;  %v722_v7 = vunpack.c.l.bf16 %v714_v3  ;;  %v723_v13 = vunpack.c.h.bf16 %v714_v3 }
 0x19e   : > { %v1986_v63 = vld [vmem:[#allocation5 + $0x18] sm:$0xff]   ;;  %v730_v8 = vunpack.c.l.bf16 %v718_v4  ;;  %v731_v14 = vunpack.c.h.bf16 %v718_v4  ;;  %v717_v23 = vld [vmem:[%s2463_s13 + $0x38] sm:$0xff]  ;;  %v716_v29 = vld [vmem:[%s2463_s13 + $0x28] sm:$0xff] }
 0x19f   : > { %v1987_v0 = vld [vmem:[#allocation5 + $0x38] sm:$0xff]   ;;  %v721_v24 = vld [vmem:[%s2463_s13 + $0x78] sm:$0xff]  ;;  %v720_v31 = vld [vmem:[%s2463_s13 + $0x68] sm:$0xff]  ;;  %v728_v35 = vunpack.c.l.bf16 %v717_v23  ;;  %v726_v37 = vunpack.c.l.bf16 %v716_v29  ;;  %v729_v39 = vunpack.c.h.bf16 %v717_v23  ;;  %v727_v43 = vunpack.c.h.bf16 %v716_v29 }
 0x1a0   : > { %1750 = vmatpush3.bf16.msra.mxu0 %v786_v51  ;;  %1844 = vmatpush3.bf16.msra.mxu1 %v786_v51  ;;  %v736_v36 = vunpack.c.l.bf16 %v721_v24  ;;  %v734_v38 = vunpack.c.l.bf16 %v720_v31  ;;  %v737_v40 = vunpack.c.h.bf16 %v721_v24  ;;  %v735_v44 = vunpack.c.h.bf16 %v720_v31  ;;  %v1999_v1 = vld [vmem:[%s2517_s11 + $0xb0] ss:$8 sps:$4 sm:$0xff] (!%p1654_p6)   ;;  %v2000_v2 = vld [vmem:[%s2517_s11 + $0xc4] ss:$8 sps:$4 sm:$0xff] (!%p1654_p6)   ;;  %v2002_v3 = vld [vmem:[%s2517_s11 + $0xc0] ss:$8 sps:$4 sm:$0xff] (!%p1654_p6)  }
 0x1a1   : > { %1751 = vmatprep.subr.bf16.mxu0 %v787_v53  ;;  %1837 = vmatprep.subr.bf16.mxu1 %v787_v53  ;;  %v2003_v4 = vld [vmem:[%s2517_s11 + $0xd4] ss:$8 sps:$4 sm:$0xff] (!%p1654_p6)  }
 0x1a4   : > { %1752 = vmatpush3.bf16.msra.mxu0 %v787_v53  ;;  %1845 = vmatpush3.bf16.msra.mxu1 %v787_v53 }
 0x1a5   : > { %1753 = vmatprep.subr.bf16.mxu0 %v788_v54  ;;  %1838 = vmatprep.subr.bf16.mxu1 %v788_v54 }
 0x1a8   : > { %1754 = vmatpush3.bf16.msra.mxu0 %v788_v54  ;;  %1846 = vmatpush3.bf16.msra.mxu1 %v788_v54 }
 0x1a9   : > { %1755 = vmatprep.subr.bf16.mxu0 %v789_v55  ;;  %1839 = vmatprep.subr.bf16.mxu1 %v789_v55 }
 0x1ac   : > { %1756 = vmatpush3.bf16.msra.mxu0 %v789_v55  ;;  %1847 = vmatpush3.bf16.msra.mxu1 %v789_v55 }
 0x1ad   : > { %1757 = vmatprep.subr.bf16.mxu0 %v790_v56  ;;  %1840 = vmatprep.subr.bf16.mxu1 %v790_v56 }
 0x1b0   : > { %1758 = vmatpush3.bf16.msra.mxu0 %v790_v56  ;;  %1848 = vmatpush3.bf16.msra.mxu1 %v790_v56 }
 0x1b1   : > { %1759 = vmatprep.subr.bf16.mxu0 %v791_v57  ;;  %1841 = vmatprep.subr.bf16.mxu1 %v791_v57 }
 0x1b4   : > { %1760 = vmatpush3.bf16.msra.mxu0 %v791_v57  ;;  %1849 = vmatpush3.bf16.msra.mxu1 %v791_v57  ;;  %v2208_v57 = vmov (!%p1654_p6), 0  }
 0x1b5   : > { %1761 = vmatprep.subr.bf16.mxu0 %v792_v58  ;;  %1842 = vmatprep.subr.bf16.mxu1 %v792_v58 }
 0x1b8   : > { %1762 = vmatpush3.bf16.msra.mxu0 %v792_v58  ;;  %1850 = vmatpush3.bf16.msra.mxu1 %v792_v58  ;;  %v1988_v58 = vld [vmem:[%s2517_s11 + $0x84] ss:$8 sps:$4 sm:$0xff] (!%p1654_p6)  }
 0x1b9   : > { %1146 = vmatprep.subr.bf16.mxu0 (!%p1654_p6), %v1988_v58  ;;  %1851 = vmatprep.subr.bf16.mxu1 (!%p1654_p6), %v1988_v58 }
 0x1bb   : > { %1764 = vmatmul.mubr.bf16.vlgmr.msra.gmra.mrb[0].mxu0 %v1982_v59  ;;  %1772 = vmatmul.mubr.bf16.vlgmr.msra.gmra.mrb[0].mxu1 %v1983_v60  ;;  %v1990_v59 = vld [vmem:[%s2517_s11 + $0x80] ss:$8 sps:$4 sm:$0xff] (!%p1654_p6)   ;;  %v1991_v60 = vld [vmem:[%s2517_s11 + $0x94] ss:$8 sps:$4 sm:$0xff] (!%p1654_p6)  }
 0x1bc   : > { %1767 = vmatprep.mubr.bf16.mxu0 %v1984_v61  ;;  %1775 = vmatprep.mubr.bf16.mxu1 %v1985_v62  ;;  %v1993_v61 = vld [vmem:[%s2517_s11 + $0x90] ss:$8 sps:$4 sm:$0xff] (!%p1654_p6)   ;;  %v1994_v62 = vld [vmem:[%s2517_s11 + $0xa4] ss:$8 sps:$4 sm:$0xff] (!%p1654_p6)  }
 0x1bd   : > { %1147 = vmatpush1.bf16.msra.mxu0 (!%p1654_p6), %v1990_v59  ;;  %1859 = vmatpush1.bf16.msra.mxu1 (!%p1654_p6), %v1990_v59 }
 0x1be   : > { %1148 = vmatprep.subr.bf16.mxu0 (!%p1654_p6), %v1991_v60  ;;  %1852 = vmatprep.subr.bf16.mxu1 (!%p1654_p6), %v1991_v60 }
 0x1c1   : > { %1149 = vmatpush1.bf16.msra.mxu0 (!%p1654_p6), %v1993_v61  ;;  %1860 = vmatpush1.bf16.msra.mxu1 (!%p1654_p6), %v1993_v61 }
 0x1c2   : > { %1150 = vmatprep.subr.bf16.mxu0 (!%p1654_p6), %v1994_v62  ;;  %1853 = vmatprep.subr.bf16.mxu1 (!%p1654_p6), %v1994_v62 }
 0x1c3   : > { %1768 = vmatmul.mubr.bf16.gmra.mrb[4].mxu0 %v1986_v63  ;;  %1776 = vmatmul.mubr.bf16.gmra.mrb[4].mxu1 %v1987_v0  ;;  %v1996_v63 = vld [vmem:[%s2517_s11 + $0xa0] ss:$8 sps:$4 sm:$0xff] (!%p1654_p6)   ;;  %v1997_v0 = vld [vmem:[%s2517_s11 + $0xb4] ss:$8 sps:$4 sm:$0xff] (!%p1654_p6)  }
 0x1c4   : > { %1178 = vmatprep.mubr.bf16.mxu0 (!%p1654_p6), %v2208_v57  ;;  %1218 = vmatprep.mubr.bf16.mxu1 (!%p1654_p6), %v2208_v57 }
 0x1c5   : > { %1151 = vmatpush1.bf16.msra.mxu0 (!%p1654_p6), %v1996_v63  ;;  %1861 = vmatpush1.bf16.msra.mxu1 (!%p1654_p6), %v1996_v63 }
 0x1c6   : > { %1152 = vmatprep.subr.bf16.mxu0 (!%p1654_p6), %v1997_v0  ;;  %1854 = vmatprep.subr.bf16.mxu1 (!%p1654_p6), %v1997_v0 }
 0x1c9   : > { %1153 = vmatpush1.bf16.msra.mxu0 (!%p1654_p6), %v1999_v1  ;;  %1862 = vmatpush1.bf16.msra.mxu1 (!%p1654_p6), %v1999_v1 }
 0x1ca   : > { %1154 = vmatprep.subr.bf16.mxu0 (!%p1654_p6), %v2000_v2  ;;  %1855 = vmatprep.subr.bf16.mxu1 (!%p1654_p6), %v2000_v2 }
 0x1cd   : > { %1155 = vmatpush1.bf16.msra.mxu0 (!%p1654_p6), %v2002_v3  ;;  %1863 = vmatpush1.bf16.msra.mxu1 (!%p1654_p6), %v2002_v3 }
 0x1ce   : > { %1156 = vmatprep.subr.bf16.mxu0 (!%p1654_p6), %v2003_v4  ;;  %1856 = vmatprep.subr.bf16.mxu1 (!%p1654_p6), %v2003_v4 }
 0x28e   : > { %v1765_v11 = vpop.f32.mrb[0].mxu0  ;;  %v1773_v12 = vpop.f32.mrb[0].mxu1 }
 0x28f   : > { %v2477_v15 = vadd.f32 %v1765_v11, %v724_v5  ;;  %v2479_v16 = vadd.f32 %v1773_v12, %v732_v6  ;;  %v891_v17 = vpop.f32.mrb[1].mxu0  ;;  %v923_v18 = vpop.f32.mrb[1].mxu1  ;;  %v2005_v5 = vld [vmem:[%s2517_s11 + $0xd0] ss:$8 sps:$4 sm:$0xff] (!%p1654_p6)   ;;  %v2006_v6 = vld [vmem:[%s2517_s11 + $0xe4] ss:$8 sps:$4 sm:$0xff] (!%p1654_p6)  }
 0x290   : > { %v2481_v19 = vadd.f32 %v891_v17, %v722_v7  ;;  %v2483_v20 = vadd.f32 %v923_v18, %v730_v8  ;;  %v1766_v21 = vpop.f32.mrb[2].mxu0  ;;  %v1774_v22 = vpop.f32.mrb[2].mxu1  ;;  %1157 = vmatpush1.bf16.msra.mxu0 (!%p1654_p6), %v2005_v5  ;;  %1864 = vmatpush1.bf16.msra.mxu1 (!%p1654_p6), %v2005_v5  ;;  %v2008_v7 = vld [vmem:[%s2517_s11 + $0xe0] ss:$8 sps:$4 sm:$0xff] (!%p1654_p6)   ;;  %v2009_v8 = vld [vmem:[%s2517_s11 + $0xf4] ss:$8 sps:$4 sm:$0xff] (!%p1654_p6)  }
 0x291   : > { %v2487_v25 = vadd.f32 %v1766_v21, %v725_v9  ;;  %v2489_v26 = vadd.f32 %v1774_v22, %v733_v10  ;;  %v894_v27 = vpop.f32.mrb[3].mxu0  ;;  %v926_v28 = vpop.f32.mrb[3].mxu1  ;;  %1158 = vmatprep.subr.bf16.mxu0 (!%p1654_p6), %v2006_v6  ;;  %1857 = vmatprep.subr.bf16.mxu1 (!%p1654_p6), %v2006_v6  ;;  %v1011_v18 = vmax.f32 (!%p1654_p6), %v2477_v15, 0.0  ;;  %v1019_v22 = vmax.f32 (!%p1654_p6), %v2479_v16, 0.0 }
 0x292   : > { %v2493_v32 = vadd.f32 %v894_v27, %v723_v13  ;;  %v2495_v34 = vadd.f32 %v926_v28, %v731_v14  ;;  %v1009_v9 = vmax.f32 (!%p1654_p6), %v2481_v19, 0.0  ;;  %v1017_v11 = vmax.f32 (!%p1654_p6), %v2483_v20, 0.0  ;;  %v2011_v13 = vld [vmem:[%s2517_s11 + $0xf0] ss:$8 sps:$4 sm:$0xff] (!%p1654_p6)  }
 0x293   : > { %v1012_v21 = vmax.f32 (!%p1654_p6), %v2487_v25, 0.0  ;;  %v1020_v23 = vmax.f32 (!%p1654_p6), %v2489_v26, 0.0 }
 0x294   : > { %1008 = sbr.rel (%p1654_p6) target bundleno = 911 (0x38f), region = 84  ;;  %v1010_v10 = vmax.f32 (!%p1654_p6), %v2493_v32, 0.0  ;;  %v1018_v12 = vmax.f32 (!%p1654_p6), %v2495_v34, 0.0  ;;  %1159 = vmatpush1.bf16.msra.mxu0 (!%p1654_p6), %v2008_v7  ;;  %1865 = vmatpush1.bf16.msra.mxu1 (!%p1654_p6), %v2008_v7 }
 0x295   : > { %1160 = vmatprep.subr.bf16.mxu0 (!%p1654_p6), %v2009_v8  ;;  %1858 = vmatprep.subr.bf16.mxu1 (!%p1654_p6), %v2009_v8  ;;  %v1026_v24 = vpack.c.bf16 (!%p1654_p6), %v1012_v21, %v1011_v18  ;;  %v1030_v27 = vpack.c.bf16 (!%p1654_p6), %v1020_v23, %v1019_v22 }
 0x296   : > { %v1769_v41 = vpop.f32.mrb[4].mxu0  ;;  %v1777_v42 = vpop.f32.mrb[4].mxu1  ;;  %v1025_v14 = vpack.c.bf16 (!%p1654_p6), %v1010_v10, %v1009_v9  ;;  %v1029_v17 = vpack.c.bf16 (!%p1654_p6), %v1018_v12, %v1017_v11 }
 0x297   : > { %v2497_v45 = vadd.f32 %v1769_v41, %v728_v35  ;;  %v2499_v46 = vadd.f32 %v1777_v42, %v736_v36  ;;  %v907_v47 = vpop.f32.mrb[5].mxu0  ;;  %v939_v48 = vpop.f32.mrb[5].mxu1 }
 0x298   : > { %v2501_v49 = vadd.f32 %v907_v47, %v726_v37  ;;  %v2503_v30 = vadd.f32 %v939_v48, %v734_v38  ;;  %v1770_v50 = vpop.f32.mrb[6].mxu0  ;;  %v1778_v33 = vpop.f32.mrb[6].mxu1  ;;  %1161 = vmatpush1.bf16.msra.mxu0 (!%p1654_p6), %v2011_v13  ;;  %1866 = vmatpush1.bf16.msra.mxu1 (!%p1654_p6), %v2011_v13 }
 0x299   : > { %v2505_v51 = vadd.f32 %v1770_v50, %v729_v39  ;;  %v2507_v52 = vadd.f32 %v1778_v33, %v737_v40  ;;  %v910_v53 = vpop.f32.mrb[7].mxu0  ;;  %v942_v54 = vpop.f32.mrb[7].mxu1  ;;  %v1015_v38 = vmax.f32 (!%p1654_p6), %v2497_v45, 0.0  ;;  %v1023_v40 = vmax.f32 (!%p1654_p6), %v2499_v46, 0.0  ;;  %v1673_v50 = vld [vmem:[%s1521_s9 + $0x2] sm:$0x3] (!%p1654_p6) }
 0x29a   : > { %v2509_v55 = vadd.f32 %v910_v53, %v727_v43  ;;  %v2511_v56 = vadd.f32 %v942_v54, %v735_v44  ;;  %v1013_v28 = vmax.f32 (!%p1654_p6), %v2501_v49, 0.0  ;;  %v1021_v31 = vmax.f32 (!%p1654_p6), %v2503_v30, 0.0 }
 0x29b   : > { %1179 = vmatmul.mubr.bf16.vlgmr.msra.gmra.mrb[0].mxu0 %v1025_v14  ;;  %1219 = vmatmul.mubr.bf16.vlgmr.msra.gmra.mrb[0].mxu1 %v1029_v17  ;;  %v1016_v39 = vmax.f32 %v2505_v51, 0.0  ;;  %v1024_v41 = vmax.f32 %v2507_v52, 0.0  ;;  %v1056_v44 = vlaneseq }
 0x29c   : > { %1188 = vmatprep.mubr.bf16.mxu0 %v2208_v57  ;;  %1228 = vmatprep.mubr.bf16.mxu1 %v2208_v57  ;;  %v1014_v29 = vmax.f32 %v2509_v55, 0.0  ;;  %v1022_v35 = vmax.f32 %v2511_v56, 0.0 }
 0x29d   : > { %v1028_v42 = vpack.c.bf16 %v1016_v39, %v1015_v38  ;;  %v1032_v43 = vpack.c.bf16 %v1024_v41, %v1023_v40  ;;  %v1057_v47 = vshrl.u32 %v1056_v44, 7 }
 0x29e   : > { %v1027_v36 = vpack.c.bf16 %v1014_v29, %v1013_v28  ;;  %v1031_v37 = vpack.c.bf16 %v1022_v35, %v1021_v31 }
 0x29f   : > { %v1058_v48 = vsub.s32 0, %v1057_v47  ;;  %v1062_v33 = vsub.s32 1, %v1057_v47 }
 0x2a1   : > { %v2561_v53 = vrot.slane %v1673_v50, %v1058_v48 }
 0x2a3   : > { %1189 = vmatmul.mubr.bf16.gmra.mrb[4].mxu0 %v1026_v24  ;;  %1229 = vmatmul.mubr.bf16.gmra.mrb[4].mxu1 %v1030_v27 }
 0x2a4   : > { %1198 = vmatprep.mubr.bf16.mxu0 %v2208_v57  ;;  %1238 = vmatprep.mubr.bf16.mxu1 %v2208_v57 }
 0x2ab   : > { %1199 = vmatmul.mubr.bf16.gmra.mrb[8].mxu0 %v1027_v36  ;;  %1239 = vmatmul.mubr.bf16.gmra.mrb[8].mxu1 %v1031_v37 }
 0x2ac   : > { %1208 = vmatprep.mubr.bf16.mxu0 %v2208_v57  ;;  %1248 = vmatprep.mubr.bf16.mxu1 %v2208_v57  ;;  %v2563_v57 = vrot.slane %v1673_v50, %v1062_v33 }
 0x2b3   : > { %1209 = vmatmul.mubr.bf16.gmra.mrb[12].mxu0 %v1028_v42  ;;  %1249 = vmatmul.mubr.bf16.gmra.mrb[12].mxu1 %v1032_v43 }
 0x36e   : > { %v1180_v54 = vpop.f32.mrb[0].mxu0  ;;  %v1220_v58 = vpop.f32.mrb[0].mxu1 }
 0x36f   : > { %v1182_v59 = vpop.f32.mrb[1].mxu0  ;;  %v1222_v60 = vpop.f32.mrb[1].mxu1  ;;  %v1181_v63 = vadd.f32 %v1180_v54, %v2561_v53  ;;  %v1221_v0 = vadd.f32 %v1220_v58, %v2561_v53 }
 0x370   : > { %v1184_v61 = vpop.f32.mrb[2].mxu0  ;;  %v1224_v62 = vpop.f32.mrb[2].mxu1  ;;  %v1183_v5 = vadd.f32 %v1182_v59, %v2563_v57  ;;  %v1223_v6 = vadd.f32 %v1222_v60, %v2563_v57 }
 0x371   : > { %v1185_v1 = vadd.f32 %v1184_v61, %v2561_v53  ;;  %v1225_v2 = vadd.f32 %v1224_v62, %v2561_v53  ;;  %v1186_v3 = vpop.f32.mrb[3].mxu0  ;;  %v1226_v4 = vpop.f32.mrb[3].mxu1 }
 0x372   : > { %v1187_v7 = vadd.f32 %v1186_v3, %v2563_v57  ;;  %v1227_v8 = vadd.f32 %v1226_v4, %v2563_v57 }
 0x373   : > { %v1259_v9 = vpack.c.bf16 %v1185_v1, %v1181_v63  ;;  %v1267_v10 = vpack.c.bf16 %v1225_v2, %v1221_v0 }
 0x374   : > { %v1260_v11 = vpack.c.bf16 %v1187_v7, %v1183_v5  ;;  %v1268_v12 = vpack.c.bf16 %v1227_v8, %v1223_v6 }
 0x375   : > { %1282 = vst [vmem:[%s2574_s30] sm:$0xff] %v1259_v9  ;;  %1290 = vst [vmem:[%s2574_s30 + $0x40] sm:$0xff] %v1267_v10 }
 0x376   : > { %1283 = vst [vmem:[%s2574_s30 + $0x8] sm:$0xff] %v1260_v11  ;;  %1291 = vst [vmem:[%s2574_s30 + $0x48] sm:$0xff] %v1268_v12  ;;  %v1190_v13 = vpop.f32.mrb[4].mxu0  ;;  %v1230_v14 = vpop.f32.mrb[4].mxu1 }
 0x377   : > { %v1192_v17 = vpop.f32.mrb[5].mxu0  ;;  %v1232_v18 = vpop.f32.mrb[5].mxu1  ;;  %v1191_v23 = vadd.f32 %v1190_v13, %v2561_v53  ;;  %v1231_v24 = vadd.f32 %v1230_v14, %v2561_v53 }
 0x378   : > { %v1194_v21 = vpop.f32.mrb[6].mxu0  ;;  %v1234_v22 = vpop.f32.mrb[6].mxu1  ;;  %v1193_v35 = vadd.f32 %v1192_v17, %v2563_v57  ;;  %v1233_v36 = vadd.f32 %v1232_v18, %v2563_v57 }
 0x379   : > { %v1195_v27 = vadd.f32 %v1194_v21, %v2561_v53  ;;  %v1235_v28 = vadd.f32 %v1234_v22, %v2561_v53  ;;  %v1196_v29 = vpop.f32.mrb[7].mxu0  ;;  %v1236_v31 = vpop.f32.mrb[7].mxu1 }
 0x37a   : > { %v1197_v37 = vadd.f32 %v1196_v29, %v2563_v57  ;;  %v1237_v38 = vadd.f32 %v1236_v31, %v2563_v57 }
 0x37b   : > { %v1261_v39 = vpack.c.bf16 %v1195_v27, %v1191_v23  ;;  %v1269_v40 = vpack.c.bf16 %v1235_v28, %v1231_v24 }
 0x37c   : > { %v1262_v41 = vpack.c.bf16 %v1197_v37, %v1193_v35  ;;  %v1270_v42 = vpack.c.bf16 %v1237_v38, %v1233_v36 }
 0x37d   : > { %1284 = vst [vmem:[%s2574_s30 + $0x10] sm:$0xff] %v1261_v39  ;;  %1292 = vst [vmem:[%s2574_s30 + $0x50] sm:$0xff] %v1269_v40 }
 0x37e   : > { %1285 = vst [vmem:[%s2574_s30 + $0x18] sm:$0xff] %v1262_v41  ;;  %1293 = vst [vmem:[%s2574_s30 + $0x58] sm:$0xff] %v1270_v42  ;;  %v1200_v43 = vpop.f32.mrb[8].mxu0  ;;  %v1240_v44 = vpop.f32.mrb[8].mxu1 }
 0x37f   : > { %v1202_v47 = vpop.f32.mrb[9].mxu0  ;;  %v1242_v48 = vpop.f32.mrb[9].mxu1  ;;  %v1201_v54 = vadd.f32 %v1200_v43, %v2561_v53  ;;  %v1241_v58 = vadd.f32 %v1240_v44, %v2561_v53 }
 0x380   : > { %v1204_v50 = vpop.f32.mrb[10].mxu0  ;;  %v1244_v33 = vpop.f32.mrb[10].mxu1  ;;  %v1203_v63 = vadd.f32 %v1202_v47, %v2563_v57  ;;  %v1243_v0 = vadd.f32 %v1242_v48, %v2563_v57 }
 0x381   : > { %v1205_v59 = vadd.f32 %v1204_v50, %v2561_v53  ;;  %v1245_v60 = vadd.f32 %v1244_v33, %v2561_v53  ;;  %v1206_v61 = vpop.f32.mrb[11].mxu0  ;;  %v1246_v62 = vpop.f32.mrb[11].mxu1 }
 0x382   : > { %v1207_v1 = vadd.f32 %v1206_v61, %v2563_v57  ;;  %v1247_v2 = vadd.f32 %v1246_v62, %v2563_v57 }
 0x383   : > { %v1263_v3 = vpack.c.bf16 %v1205_v59, %v1201_v54  ;;  %v1271_v4 = vpack.c.bf16 %v1245_v60, %v1241_v58 }
 0x384   : > { %v1264_v5 = vpack.c.bf16 %v1207_v1, %v1203_v63  ;;  %v1272_v6 = vpack.c.bf16 %v1247_v2, %v1243_v0 }
 0x385   : > { %1286 = vst [vmem:[%s2574_s30 + $0x20] sm:$0xff] %v1263_v3  ;;  %1294 = vst [vmem:[%s2574_s30 + $0x60] sm:$0xff] %v1271_v4 }
 0x386   : > { %1287 = vst [vmem:[%s2574_s30 + $0x28] sm:$0xff] %v1264_v5  ;;  %1295 = vst [vmem:[%s2574_s30 + $0x68] sm:$0xff] %v1272_v6  ;;  %v1210_v7 = vpop.f32.mrb[12].mxu0  ;;  %v1250_v8 = vpop.f32.mrb[12].mxu1 }
 0x387   : > { %v1212_v9 = vpop.f32.mrb[13].mxu0  ;;  %v1252_v10 = vpop.f32.mrb[13].mxu1  ;;  %v1211_v13 = vadd.f32 %v1210_v7, %v2561_v53  ;;  %v1251_v14 = vadd.f32 %v1250_v8, %v2561_v53 }
 0x388   : > { %v1214_v11 = vpop.f32.mrb[14].mxu0  ;;  %v1254_v12 = vpop.f32.mrb[14].mxu1  ;;  %v1213_v23 = vadd.f32 %v1212_v9, %v2563_v57  ;;  %v1253_v24 = vadd.f32 %v1252_v10, %v2563_v57 }
 0x389   : > { %v1215_v17 = vadd.f32 %v1214_v11, %v2561_v53  ;;  %v1255_v18 = vadd.f32 %v1254_v12, %v2561_v53  ;;  %v1216_v21 = vpop.f32.mrb[15].mxu0  ;;  %v1256_v22 = vpop.f32.mrb[15].mxu1 }
 0x38a   : > { %v1217_v27 = vadd.f32 %v1216_v21, %v2563_v57  ;;  %v1257_v28 = vadd.f32 %v1256_v22, %v2563_v57 }
 0x38b   : > { %v1265_v29 = vpack.c.bf16 %v1215_v17, %v1211_v13  ;;  %v1273_v31 = vpack.c.bf16 %v1255_v18, %v1251_v14 }
 0x38c   : > { %v1266_v35 = vpack.c.bf16 %v1217_v27, %v1213_v23  ;;  %v1274_v36 = vpack.c.bf16 %v1257_v28, %v1253_v24 }
 0x38d   : > { %1288 = vst [vmem:[%s2574_s30 + $0x30] sm:$0xff] %v1265_v29  ;;  %1296 = vst [vmem:[%s2574_s30 + $0x70] sm:$0xff] %v1273_v31 }
 0x38e   : > { %1289 = vst [vmem:[%s2574_s30 + $0x38] sm:$0xff] %v1266_v35  ;;  %1297 = vst [vmem:[%s2574_s30 + $0x78] sm:$0xff] %v1274_v36 }
 0x38f PF: > { %p1692_p0 = scmp.ne.s32.totalorder %s2188_s24, 2 }
 0x390   : > { %v1303_v53 = vpack.c.bf16 (!%p1692_p0), %v2493_v32, %v2481_v19  ;;  %v2012_v37 = vld [vmem:[#allocation11] sm:$0xff] (!%p1692_p0)   ;;  %v2209_v38 = vmov (!%p1692_p0), 0.0   ;;  %v1304_v57 = vpack.c.bf16 (!%p1692_p0), %v2487_v25, %v2477_v15  ;;  %vm2210_vm0 = vmmov (!%p1692_p0), 0   ;;  %v2013_v39 = vld [vmem:[#allocation11 + $0x8] sm:$0xff] (!%p1692_p0)   ;;  %v2014_v19 = vld [vmem:[#allocation11 + $0x10] sm:$0xff] (!%p1692_p0)  }
 0x391   : > { %1300 = sbr.rel (%p1692_p0) target bundleno = 1376 (0x560), region = 88  ;;  %1779 = vmatprep.subr.bf16.mxu0 (!%p1692_p0), %v2209_v38  ;;  %1799 = vmatprep.subr.bf16.mxu1 (!%p1692_p0), %v2209_v38  ;;  %v1305_v40 = vpack.c.bf16 (!%p1692_p0), %v2509_v55, %v2501_v49  ;;  %v1306_v15 = vpack.c.bf16 (!%p1692_p0), %v2505_v51, %v2497_v45  ;;  %v2015_v25 = vld [vmem:[#allocation11 + $0x18] sm:$0xff] (!%p1692_p0)   ;;  %v1307_v32 = vpack.c.bf16 (!%p1692_p0), %v2495_v34, %v2483_v20  ;;  %v2016_v41 = vld [vmem:[#allocation11 + $0x20] sm:$0xff] (!%p1692_p0)  }
 0x392   : > { %1780 = vmatpush3.bf16.msra.mxu0 (!%p1692_p0), %v1303_v53  ;;  %1795 = vmatprep.mubr.msk.bf16.mxu0 (!%p1692_p0), %vm2210_vm0, %v2209_v38  ;;  %v1308_v49 = vpack.c.bf16 (!%p1692_p0), %v2489_v26, %v2479_v16  ;;  %v1309_v45 = vpack.c.bf16 (!%p1692_p0), %v2511_v56, %v2503_v30  ;;  %v1310_v20 = vpack.c.bf16 (!%p1692_p0), %v2507_v52, %v2499_v46  ;;  %v1302_v34 = vld [vmem:[%s2680_s4] sm:$0xf] (!%p1692_p0)  ;;  %v2017_v16 = vld [vmem:[#allocation11 + $0x28] sm:$0xff] (!%p1692_p0)   ;;  %v2018_v26 = vld [vmem:[#allocation11 + $0x30] sm:$0xff] (!%p1692_p0)  }
 0x393   : > { %1781 = vmatprep.subr.bf16.mxu0 (!%p1692_p0), %v2209_v38  ;;  %1800 = vmatpush3.bf16.msra.mxu1 (!%p1692_p0), %v2012_v37  ;;  %v2019_v51 = vld [vmem:[#allocation11 + $0x38] sm:$0xff] (!%p1692_p0)  }
 0x394   : > { %1815 = vmatprep.mubr.msk.bf16.mxu1 (!%p1692_p0), %vm2210_vm0, %v2209_v38  ;;  %1801 = vmatprep.subr.bf16.mxu1 (!%p1692_p0), %v2209_v38  ;;  %v1301_v30 = vld [vmem:[#allocation4] sm:$0xff] (!%p1692_p0) }
 0x395   : > { %v1693_v44 = vld [vmem:[%s2682_s6] ss:$0 sm:$0xff] (!%p1692_p0) }
 0x396   : > { %1782 = vmatpush3.bf16.msra.mxu0 (!%p1692_p0), %v1304_v57 }
 0x397   : > { %1783 = vmatprep.subr.bf16.mxu0 (!%p1692_p0), %v2209_v38  ;;  %1802 = vmatpush3.bf16.msra.mxu1 (!%p1692_p0), %v2013_v39 }
 0x398   : > { %1803 = vmatprep.subr.bf16.mxu1 %v2209_v38 }
 0x39a   : > { %1784 = vmatpush3.bf16.msra.mxu0 %v1305_v40 }
 0x39b   : > { %1785 = vmatprep.subr.bf16.mxu0 %v2209_v38  ;;  %1804 = vmatpush3.bf16.msra.mxu1 %v2014_v19 }
 0x39c   : > { %1805 = vmatprep.subr.bf16.mxu1 %v2209_v38 }
 0x39e   : > { %1786 = vmatpush3.bf16.msra.mxu0 %v1306_v15 }
 0x39f   : > { %1787 = vmatprep.subr.bf16.mxu0 %v2209_v38  ;;  %1806 = vmatpush3.bf16.msra.mxu1 %v2015_v25 }
 0x3a0   : > { %1807 = vmatprep.subr.bf16.mxu1 %v2209_v38 }
 0x3a2   : > { %1788 = vmatpush3.bf16.msra.mxu0 %v1307_v32 }
 0x3a3   : > { %1789 = vmatprep.subr.bf16.mxu0 %v2209_v38  ;;  %1808 = vmatpush3.bf16.msra.mxu1 %v2016_v41 }
 0x3a4   : > { %1809 = vmatprep.subr.bf16.mxu1 %v2209_v38 }
 0x3a6   : > { %1790 = vmatpush3.bf16.msra.mxu0 %v1308_v49 }
 0x3a7   : > { %1791 = vmatprep.subr.bf16.mxu0 %v2209_v38  ;;  %1810 = vmatpush3.bf16.msra.mxu1 %v2017_v16 }
 0x3a8   : > { %1811 = vmatprep.subr.bf16.mxu1 %v2209_v38 }
 0x3aa   : > { %1792 = vmatpush3.bf16.msra.mxu0 %v1309_v45 }
 0x3ab   : > { %1793 = vmatprep.subr.bf16.mxu0 %v2209_v38  ;;  %1812 = vmatpush3.bf16.msra.mxu1 %v2018_v26 }
 0x3ac   : > { %1813 = vmatprep.subr.bf16.mxu1 %v2209_v38 }
 0x3ae   : > { %1794 = vmatpush3.bf16.msra.mxu0 %v1310_v20 }
 0x3af   : > { %1814 = vmatpush3.bf16.msra.mxu1 %v2019_v51 }
 0x3b1   : > { %1796 = vmatmul.mubr.bf16.vlgmr.msra.gmra.mrb[0].mxu0 %v1302_v34 }
 0x484   : > { %v1345_v55 = vpop.f32.mrb[0].mxu0 }
 0x485   : > { %v1351_v56 = vadd.f32 %v1345_v55, %v1301_v30  ;;  %v1797_v42 = vpop.f32.mrb[1].mxu0 }
 0x486   : > { %v1348_v46 = vpop.f32.mrb[2].mxu0 }
 0x487   : > { %1352 = vst [vmem:[#allocation4] sm:$0xff] %v1351_v56  ;;  %v1798_v52 = vpop.f32.mrb[3].mxu0  ;;  %v1357_v43 = vpack.c.bf16 %v1351_v56, %v1351_v56 }
 0x489   : > { %1816 = vmatmul.mubr.bf16.vlgmr.msra.gmra.mrb[0].mxu1 %v1357_v43 }
 0x55c   : > { %v1463_v47 = vpop.f32.mrb[0].mxu1 }
 0x55d   : > { %v1464_v48 = vadd.f32 %v1693_v44, %v1463_v47  ;;  %v1817_v50 = vpop.f32.mrb[1].mxu1 }
 0x55e   : > { %v1466_v33 = vpop.f32.mrb[2].mxu1 }
 0x55f   : > { %1469 = vst [vmem:[#allocation13] sm:$0xff] %v1464_v48  ;;  %v1818_v54 = vpop.f32.mrb[3].mxu1 }
 0x560 PF: > { %s2697_s17 = sadd.s32 4294967295, %s2196_s26   ;;  %s2211_s18 = smov [#allocation13]  }
 0x561   : > { %p2641_p1 = scmp.eq.s32.totalorder %s2697_s17, 2  ;;  %s1477_s20 = sshll.u32 %s2211_s18, 4  ;;  %s1478_s20 = int_to_ptr.vmem [resolvable:$true] %s1477_s20 }
 0x562   : > { %s2132_s21 = scalar_lea.vmem %s1478_s20, 128  ;;  %p2139_p3 = scmp.lt.s32.totalorder %s1478_s20, %s1478_s20 }
 0x563   : > { %p2133_p4 = scmp.ne.s32.totalorder %s1478_s20, %s2132_s21  ;;  %p2140_p8 = scmp.lt.s32.totalorder %s2132_s21, %s2132_s21 }
 0x565   : > { %p2134_p7 = pnand %p2133_p4, %p2641_p1  ;;  %p2141_p5 = por %p2140_p8, %p2139_p3 }
 0x567   : > { %p2135_p9 = pneg %p2134_p7 }
 0x569   : > { %p2142_p2 = pnand %p2141_p5, %p2135_p9 }
 0x56b   : > { %2145 = shalt.err (!%p2142_p2)
}
 0x56c   : > { %s2146_s13 = scalar_lea.hbm %s2683_s7, 128 }
 0x56d   : > { %p2147_p10 = scmp.ne.s32.totalorder %s2683_s7, %s2146_s13  ;;  %p2152_p13 = scmp.lt.u32.totalorder %s2146_s13, %s2683_s7 }
 0x56f   : > { %p2148_p11 = pnand %p2147_p10, %p2641_p1 }
 0x571   : > { %p2149_p12 = pneg %p2148_p11 }
 0x573   : > { %p2154_p6 = pnand %p2152_p13, %p2149_p12 }
 0x575   : > { %2157 = shalt.err (!%p2154_p6)
}
 0x576   : > { %1884 = dma.vmem_to_hbm [thread:$0]  (%p2641_p1), %s1478_s20, 128, %s2683_s7, [#allocation7]  }
 0x577   : > { %2183 = dma.done.wait (%p2641_p1), [#allocation7], 128  }
 0x578   : > { %2185 = vsyncadd (%p2641_p1), [#allocation7], 4294967168 }
 0x579 PF: > { %s21_s26 = sadd.s32 1, %s2196_s26   ;;  %s2699_s24 = smov %s2192_s25 }
 0x57a   : > { %p18_p0 = scmp.ge.s32.totalorder %s21_s26, 5   ;;  %s2700_s25 = smov %s2702_s10 }
 0x57c   :  { %20 = sbr.rel (!%p18_p0) target bundleno = 5 (0x5), region = 127 }
 0x583   :  { %1490 = vsyncpa [#allocation6], 1 }
 0x584   :  { %1492 = vsyncpa [#allocation6 + $0x1], 1 }
 0x585   :  { %1493 = vsyncpa [#allocation9], 1 }
 0x586   :  { %1494 = vsyncpa [#allocation12], 1 }
 0x587   :  { %1495 = vsyncpa [#allocation7], 1 }
 0x588   :  { %1497 = vsyncpa [#allocation7 + $0x1], 1 }

</bundles_post_ra>
